<compile_context>
chip_gen: v6e
topology: v6e:2x2x1
jax: 0.10.0
libtpu: 0.0.40
codegen_flags: <defaults>
</compile_context>

<pallas_src>
import functools

import jax
import jax.numpy as jnp
from jax.experimental import pallas as pl
from jax.experimental.pallas import tpu as pltpu

BN_EPS = 1e-5
NEG_BIG = -3e38  # large finite negative for the pooling mask (avoids inf/NaN)
LANE = 128
SUBLANE = 8


def _round_up(v, m):
    return (v + m - 1) // m * m


def mnistsp_kernel(x_ref, a_ref, mask_ref, wstack_ref, w2_ref, vecs_ref, out_ref):
    f32, bf16 = jnp.float32, jnp.bfloat16
    N = x_ref.shape[0]            # number of nodes
    HP = x_ref.shape[1]           # lane-padded hidden width (multiple of 128)
    CP = out_ref.shape[1]         # lane-padded class width (multiple of 128)

    vecs = vecs_ref[...]          # [9, 2*HP] f32: bemb, (brel,gamma,beta)x2, b1, b2

    # node_emb: Linear(in_ch -> H), zero-padded to HP lanes.
    h = jnp.dot(x_ref[...], wstack_ref[0, :, :HP],
                preferred_element_type=f32) + vecs[0:1, :HP]

    inv_n = 1.0 / N
    ones_row = jnp.ones((1, N), f32)   # hoisted: JAX does not CSE broadcasts

    for i in range(2):
        brel = vecs[1 + 3 * i:2 + 3 * i, :HP]
        gam = vecs[2 + 3 * i:3 + 3 * i, :HP]
        bet = vecs[3 + 3 * i:4 + 3 * i, :HP]

        # GraphConv (PyG, aggr='add'):  out = lin_rel(A @ h) + lin_root(h)
        # reordered as  A @ (h @ Wrel) + h @ Wroot  with [Wrel | Wroot] stacked
        # on a 128-lane boundary -> one wide projection, zero-cost split.
        proj = jnp.dot(h.astype(bf16), wstack_ref[1 + i],
                       preferred_element_type=f32)                    # [N, 2*HP]
        p_nbr, r_root = proj[:, :HP], proj[:, HP:]
        agg = jnp.dot(a_ref[...], p_nbr.astype(bf16),
                      preferred_element_type=f32)                     # [N, HP]
        h_new = agg + r_root + brel

        # BatchNorm1d over nodes (training-mode batch stats, biased var).
        # Column sums via MXU: ones[1,N] @ [h_new | h_new^2] -> one tiny matmul
        # instead of two cross-sublane reductions.
        moments = jnp.dot(ones_row,
                          jnp.concatenate([h_new, h_new * h_new], axis=-1),
                          preferred_element_type=f32)                 # [1, 2*HP]
        mean = moments[:, :HP] * inv_n
        var = jnp.maximum(moments[:, HP:] * inv_n - mean * mean, 0.0)
        scale = gam * jax.lax.rsqrt(var + BN_EPS)
        shift = bet - mean * scale
        h = jnp.maximum(h_new * scale + shift, 0.0)                   # ReLU

    # global_max_pool: additive [Gp, N] membership mask (0 member, -3e38 not).
    # TODO(synk): at realistic sizes replace this materialized [Gp,N,HP]
    # broadcast with a running per-graph max accumulator over node-row tiles.
    mask = mask_ref[...]                                              # [Gp, N]
    pooled = jnp.max(h[None, :, :] + mask[:, :, None], axis=1)        # [Gp, HP]

    # causal_mlp: Linear(H -> 2H), ReLU, Linear(2H -> C); lane-dense output.
    z = jnp.maximum(
        jnp.dot(pooled.astype(bf16), wstack_ref[3],
                preferred_element_type=f32) + vecs[7:8, :], 0.0)      # [Gp, 2*HP]
    out_ref[...] = (jnp.dot(z.astype(bf16), w2_ref[...],
                            preferred_element_type=f32) + vecs[8:9, :CP])


def pack_params(params, in_ch, hid, num_classes):
    """Parameter-only packing; call ONCE and reuse across forwards."""
    hp = _round_up(max(hid, LANE), LANE)
    cp = _round_up(max(num_classes, LANE), LANE)
    assert cp <= 2 * hp, "class padding must fit inside the vecs row width"
    f32 = jnp.float32

    def pad2(w, rows, cols, r0=0, c0=0):
        return jnp.zeros((rows, cols), f32).at[
            r0:r0 + w.shape[0], c0:c0 + w.shape[1]].set(w)

    # Weight stack [4, HP, 2*HP] bf16: node_emb, [Wrel|Wroot] per conv, mlp w1.
    wemb = pad2(params["wemb"], hp, 2 * hp)
    conv0 = pad2(params["wrel0"], hp, 2 * hp) + pad2(params["wroot0"], hp, 2 * hp, 0, hp)
    conv1 = pad2(params["wrel1"], hp, 2 * hp) + pad2(params["wroot1"], hp, 2 * hp, 0, hp)
    w1 = pad2(params["w1"], hp, 2 * hp)
    wstack = jnp.stack([wemb, conv0, conv1, w1], 0).astype(jnp.bfloat16)

    # Final classifier weight, lane-padded output width.
    w2 = pad2(params["w2"], 2 * hp, cp).astype(jnp.bfloat16)

    # Bias / BN row stack [9, 2*HP] f32 (padded lanes are zero -> gamma=0 there
    # keeps padded hidden lanes at exactly zero through BN).
    def row(v):
        return pad2(v, 1, 2 * hp)

    vecs = jnp.concatenate([
        row(params["bemb"]),
        row(params["brel0"]), row(params["g0"]), row(params["be0"]),
        row(params["brel1"]), row(params["g1"]), row(params["be1"]),
        row(params["b1"]),
        row(params["b2"]),
    ], axis=0)
    return wstack, w2, vecs


def _pack_batch(x, edge_index, edge_attr, batch, num_graphs, hp, gp):
    """Per-call packing of graph data only (dense A, padded features, pool mask)."""
    N, in_ch = x.shape

    # Dense adjacency with scatter-add (duplicate edges accumulate, like PyG).
    ew = edge_attr.reshape(-1)
    src, dst = edge_index[0], edge_index[1]
    A = jnp.zeros((N, N), jnp.float32).at[dst, src].add(ew).astype(jnp.bfloat16)

    # Node features zero-padded to HP lanes (matching zero-padded wemb rows).
    x_pad = jnp.zeros((N, hp), jnp.float32).at[:, :in_ch].set(x).astype(jnp.bfloat16)

    # Additive pooling mask [Gp, N]: 0 for member nodes, -3e38 otherwise.
    # Padded fake-graph rows (g >= num_graphs) use all-zero masks so their
    # pooled rows stay finite; they are sliced away in the wrapper.
    graph_ids = jnp.arange(gp, dtype=batch.dtype)
    member = batch[None, :] == graph_ids[:, None]
    member = member | (graph_ids[:, None] >= num_graphs)
    mask = jnp.where(member, 0.0, NEG_BIG).astype(jnp.float32)
    return x_pad, A, mask


@functools.partial(jax.jit, static_argnames=("num_graphs", "num_classes"))
def mnistsp_forward(x, edge_index, edge_attr, batch, wstack, w2, vecs,
                    num_graphs, num_classes):
    hp = wstack.shape[1]
    cp = w2.shape[1]
    gp = _round_up(max(num_graphs, SUBLANE), SUBLANE)

    x_pad, A, mask = _pack_batch(x, edge_index, edge_attr, batch, num_graphs, hp, gp)

    vmem = pl.BlockSpec(memory_space=pltpu.MemorySpace.VMEM)
    out = pl.pallas_call(
        mnistsp_kernel,
        out_shape=jax.ShapeDtypeStruct((gp, cp), jnp.float32),   # lane-dense store
        in_specs=[vmem] * 6,
        out_specs=vmem,
    )(x_pad, A, mask, wstack, w2, vecs)
    return out[:num_graphs, :num_classes]


def init_params(key, in_ch, hid, num_classes):
    """Deterministic synthetic parameters; shapes follow MNISTSPNet.__init__."""
    ks = jax.random.split(key, 12)

    def w(k, shape):
        return (0.1 * jax.random.normal(k, shape)).astype(jnp.float32)

    p = {}
    # node_emb = Linear(in_ch, hid)
    p["wemb"] = w(ks[0], (in_ch, hid))
    p["bemb"] = w(ks[1], (1, hid))
    # convs[0] = GraphConv(hid, hid): lin_rel (with bias), lin_root (no bias)
    p["wrel0"] = w(ks[2], (hid, hid))
    p["brel0"] = w(ks[3], (1, hid))
    p["wroot0"] = w(ks[4], (hid, hid))
    # batch_norms[0]: gamma=1, beta=0 (fresh BatchNorm)
    p["g0"] = jnp.ones((1, hid), jnp.float32)
    p["be0"] = jnp.zeros((1, hid), jnp.float32)
    # convs[1]
    p["wrel1"] = w(ks[5], (hid, hid))
    p["brel1"] = w(ks[6], (1, hid))
    p["wroot1"] = w(ks[7], (hid, hid))
    p["g1"] = jnp.ones((1, hid), jnp.float32)
    p["be1"] = jnp.zeros((1, hid), jnp.float32)
    # causal_mlp = Linear(hid, 2*hid), ReLU, Linear(2*hid, num_classes)
    p["w1"] = w(ks[8], (hid, 2 * hid))
    p["b1"] = w(ks[9], (1, 2 * hid))
    p["w2"] = w(ks[10], (2 * hid, num_classes))
    p["b2"] = w(ks[11], (1, num_classes))
    return p


def reference_forward(x, edge_index, edge_attr, batch, p, num_graphs):
    """Pure-JAX f32 reference (original op ordering) for a correctness check."""
    ew = edge_attr.reshape(-1)
    src, dst = edge_index[0], edge_index[1]
    N = x.shape[0]
    A = jnp.zeros((N, N), jnp.float32).at[dst, src].add(ew)
    h = x @ p["wemb"] + p["bemb"]
    for i in range(2):
        agg = A @ h
        h2 = agg @ p[f"wrel{i}"] + p[f"brel{i}"] + h @ p[f"wroot{i}"]
        m = h2.mean(0, keepdims=True)
        v = ((h2 - m) ** 2).mean(0, keepdims=True)
        h = jnp.maximum((h2 - m) / jnp.sqrt(v + BN_EPS) * p[f"g{i}"] + p[f"be{i}"], 0.0)
    mask = batch[:, None] == jnp.arange(num_graphs)[None, :]          # [N, G]
    pooled = jnp.max(jnp.where(mask.T[:, :, None], h[None, :, :], -jnp.inf), axis=1)
    z = jnp.maximum(pooled @ p["w1"] + p["b1"], 0.0)
    return z @ p["w2"] + p["b2"]


if __name__ == "__main__":
    N, E, G = 64, 256, 4            # nodes, edges, graphs in the batch
    in_ch, hid, num_classes = 5, 32, 10

    key = jax.random.PRNGKey(0)
    k1, k2, k3, kp = jax.random.split(key, 4)
    x = jax.random.normal(k1, (N, in_ch), dtype=jnp.float32)
    edge_index = jax.random.randint(k2, (2, E), 0, N, dtype=jnp.int32)
    edge_attr = jax.random.uniform(k3, (E, 1), dtype=jnp.float32)
    batch = jnp.repeat(jnp.arange(G, dtype=jnp.int32), N // G)

    params = init_params(kp, in_ch, hid, num_classes)

    # Parameter packing hoisted out of the per-forward path: done once, reused.
    wstack, w2, vecs = pack_params(params, in_ch, hid, num_classes)

    out = mnistsp_forward(x, edge_index, edge_attr, batch, wstack, w2, vecs,
                          num_graphs=G, num_classes=num_classes)
    out = jax.block_until_ready(out)

    ref = reference_forward(x, edge_index, edge_attr, batch, params, G)
    assert out.shape == (G, num_classes), out.shape
    # bf16 MXU operands (f32 accumulation) -> slightly looser tolerance vs pure-f32 ref.
    assert jnp.allclose(out, ref, atol=5e-2, rtol=5e-2), (out, ref)

    print("KERNEL_OK")
</pallas_src>

<mosaic_0001>
module attributes {stable_mosaic.version = 11 : i64} {
  func.func private @main(%arg0: i32) attributes {dimension_semantics = [#tpu.dimension_semantics<core_parallel>], iteration_bounds = array<i64: 2>, tpu.core_type = #tpu.core_type<sc_scalar_subcore>, window_params = []} {
    return
  }
}

module attributes {stable_mosaic.version = 11 : i64} {
  func.func private @main(%arg0: i32) attributes {dimension_semantics = [#tpu.dimension_semantics<core_parallel>], iteration_bounds = array<i64: 2>, tpu.core_type = #tpu.core_type<sc_scalar_subcore>, window_params = []} {
    return
  }
}

module attributes {stable_mosaic.version = 11 : i64} {
  func.func @mnistsp_kernel(%arg0: memref<64x128xbf16, #tpu.memory_space<vmem>>, %arg1: memref<64x64xbf16, #tpu.memory_space<vmem>>, %arg2: memref<8x64xf32, #tpu.memory_space<vmem>>, %arg3: memref<4x128x256xbf16, #tpu.memory_space<vmem>>, %arg4: memref<256x128xbf16, #tpu.memory_space<vmem>>, %arg5: memref<9x256xf32, #tpu.memory_space<vmem>>, %arg6: memref<8x128xf32, #tpu.memory_space<vmem>>) attributes {dimension_semantics = [], scalar_prefetch = 0 : i64, scratch_operands = 0 : i64, tpu.core_type = #tpu.core_type<tc>} {
    %c0 = arith.constant 0 : index
    %c0_0 = arith.constant 0 : index
    %0 = vector.load %arg5[%c0, %c0_0] : memref<9x256xf32, #tpu.memory_space<vmem>>, vector<9x256xf32>
    %c0_1 = arith.constant 0 : index
    %c0_2 = arith.constant 0 : index
    %1 = vector.load %arg0[%c0_1, %c0_2] : memref<64x128xbf16, #tpu.memory_space<vmem>>, vector<64x128xbf16>
    %c0_3 = arith.constant 0 : index
    %c0_4 = arith.constant 0 : index
    %c0_5 = arith.constant 0 : index
    %2 = vector.load %arg3[%c0_3, %c0_4, %c0_5] : memref<4x128x256xbf16, #tpu.memory_space<vmem>>, vector<1x128x128xbf16>
    %3 = vector.shape_cast %2 : vector<1x128x128xbf16> to vector<128x128xbf16>
    %cst = arith.constant dense<0.000000e+00> : vector<64x128xf32>
    %4 = tpu.matmul %1, %3, %cst {dimension_numbers = #tpu.dot_dimension_numbers<[1], [0], [0], [1], [0, 0, 1, 1], [], []>} : vector<64x128xbf16>, vector<128x128xbf16>, vector<64x128xf32> -> vector<64x128xf32>
    %5 = vector.extract_strided_slice %0 {offsets = [0, 0], sizes = [1, 128], strides = [1, 1]} : vector<9x256xf32> to vector<1x128xf32>
    %6 = vector.broadcast %5 : vector<1x128xf32> to vector<64x128xf32>
    %7 = arith.addf %4, %6 : vector<64x128xf32>
    %cst_6 = arith.constant 1.000000e+00 : f32
    %8 = vector.broadcast %cst_6 : f32 to vector<1x64xf32>
    %9 = vector.extract_strided_slice %0 {offsets = [1, 0], sizes = [1, 128], strides = [1, 1]} : vector<9x256xf32> to vector<1x128xf32>
    %10 = vector.extract_strided_slice %0 {offsets = [2, 0], sizes = [1, 128], strides = [1, 1]} : vector<9x256xf32> to vector<1x128xf32>
    %11 = vector.extract_strided_slice %0 {offsets = [3, 0], sizes = [1, 128], strides = [1, 1]} : vector<9x256xf32> to vector<1x128xf32>
    %12 = arith.truncf %7 : vector<64x128xf32> to vector<64x128xbf16>
    %c1 = arith.constant 1 : index
    %c0_7 = arith.constant 0 : index
    %c0_8 = arith.constant 0 : index
    %13 = vector.load %arg3[%c1, %c0_7, %c0_8] : memref<4x128x256xbf16, #tpu.memory_space<vmem>>, vector<1x128x256xbf16>
    %14 = vector.shape_cast %13 : vector<1x128x256xbf16> to vector<128x256xbf16>
    %cst_9 = arith.constant dense<0.000000e+00> : vector<64x256xf32>
    %15 = tpu.matmul %12, %14, %cst_9 {dimension_numbers = #tpu.dot_dimension_numbers<[1], [0], [0], [1], [0, 0, 1, 1], [], []>} : vector<64x128xbf16>, vector<128x256xbf16>, vector<64x256xf32> -> vector<64x256xf32>
    %16 = vector.extract_strided_slice %15 {offsets = [0, 0], sizes = [64, 128], strides = [1, 1]} : vector<64x256xf32> to vector<64x128xf32>
    %17 = vector.extract_strided_slice %15 {offsets = [0, 128], sizes = [64, 128], strides = [1, 1]} : vector<64x256xf32> to vector<64x128xf32>
    %c0_10 = arith.constant 0 : index
    %c0_11 = arith.constant 0 : index
    %18 = vector.load %arg1[%c0_10, %c0_11] : memref<64x64xbf16, #tpu.memory_space<vmem>>, vector<64x64xbf16>
    %19 = arith.truncf %16 : vector<64x128xf32> to vector<64x128xbf16>
    %cst_12 = arith.constant dense<0.000000e+00> : vector<64x128xf32>
    %20 = tpu.matmul %18, %19, %cst_12 {dimension_numbers = #tpu.dot_dimension_numbers<[1], [0], [0], [1], [0, 0, 1, 1], [], []>} : vector<64x64xbf16>, vector<64x128xbf16>, vector<64x128xf32> -> vector<64x128xf32>
    %21 = arith.addf %20, %17 : vector<64x128xf32>
    %22 = vector.broadcast %9 : vector<1x128xf32> to vector<64x128xf32>
    %23 = arith.addf %21, %22 : vector<64x128xf32>
    %24 = arith.mulf %23, %23 : vector<64x128xf32>
    %25 = tpu.concatenate %23, %24 in 1 : vector<64x128xf32>, vector<64x128xf32> -> vector<64x256xf32>
    %cst_13 = arith.constant dense<0.000000e+00> : vector<1x256xf32>
    %26 = tpu.matmul %8, %25, %cst_13 {dimension_numbers = #tpu.dot_dimension_numbers<[1], [0], [0], [1], [0, 0, 1, 1], [], []>} : vector<1x64xf32>, vector<64x256xf32>, vector<1x256xf32> -> vector<1x256xf32>
    %27 = vector.extract_strided_slice %26 {offsets = [0, 0], sizes = [1, 128], strides = [1, 1]} : vector<1x256xf32> to vector<1x128xf32>
    %cst_14 = arith.constant 1.562500e-02 : f32
    %28 = vector.broadcast %cst_14 : f32 to vector<1x128xf32>
    %29 = arith.mulf %27, %28 : vector<1x128xf32>
    %30 = vector.extract_strided_slice %26 {offsets = [0, 128], sizes = [1, 128], strides = [1, 1]} : vector<1x256xf32> to vector<1x128xf32>
    %cst_15 = arith.constant 1.562500e-02 : f32
    %31 = vector.broadcast %cst_15 : f32 to vector<1x128xf32>
    %32 = arith.mulf %30, %31 : vector<1x128xf32>
    %33 = arith.mulf %29, %29 : vector<1x128xf32>
    %34 = arith.subf %32, %33 : vector<1x128xf32>
    %cst_16 = arith.constant 0.000000e+00 : f32
    %35 = vector.broadcast %cst_16 : f32 to vector<1x128xf32>
    %36 = arith.maximumf %34, %35 : vector<1x128xf32>
    %cst_17 = arith.constant 9.99999974E-6 : f32
    %37 = vector.broadcast %cst_17 : f32 to vector<1x128xf32>
    %38 = arith.addf %36, %37 : vector<1x128xf32>
    %39 = math.rsqrt %38 : vector<1x128xf32>
    %40 = arith.mulf %10, %39 : vector<1x128xf32>
    %41 = arith.mulf %29, %40 : vector<1x128xf32>
    %42 = arith.subf %11, %41 : vector<1x128xf32>
    %43 = vector.broadcast %40 : vector<1x128xf32> to vector<64x128xf32>
    %44 = arith.mulf %23, %43 : vector<64x128xf32>
    %45 = vector.broadcast %42 : vector<1x128xf32> to vector<64x128xf32>
    %46 = arith.addf %44, %45 : vector<64x128xf32>
    %cst_18 = arith.constant 0.000000e+00 : f32
    %47 = vector.broadcast %cst_18 : f32 to vector<64x128xf32>
    %48 = arith.maximumf %46, %47 : vector<64x128xf32>
    %49 = vector.extract_strided_slice %0 {offsets = [4, 0], sizes = [1, 128], strides = [1, 1]} : vector<9x256xf32> to vector<1x128xf32>
    %50 = vector.extract_strided_slice %0 {offsets = [5, 0], sizes = [1, 128], strides = [1, 1]} : vector<9x256xf32> to vector<1x128xf32>
    %51 = vector.extract_strided_slice %0 {offsets = [6, 0], sizes = [1, 128], strides = [1, 1]} : vector<9x256xf32> to vector<1x128xf32>
    %52 = arith.truncf %48 : vector<64x128xf32> to vector<64x128xbf16>
    %c2 = arith.constant 2 : index
    %c0_19 = arith.constant 0 : index
    %c0_20 = arith.constant 0 : index
    %53 = vector.load %arg3[%c2, %c0_19, %c0_20] : memref<4x128x256xbf16, #tpu.memory_space<vmem>>, vector<1x128x256xbf16>
    %54 = vector.shape_cast %53 : vector<1x128x256xbf16> to vector<128x256xbf16>
    %cst_21 = arith.constant dense<0.000000e+00> : vector<64x256xf32>
    %55 = tpu.matmul %52, %54, %cst_21 {dimension_numbers = #tpu.dot_dimension_numbers<[1], [0], [0], [1], [0, 0, 1, 1], [], []>} : vector<64x128xbf16>, vector<128x256xbf16>, vector<64x256xf32> -> vector<64x256xf32>
    %56 = vector.extract_strided_slice %55 {offsets = [0, 0], sizes = [64, 128], strides = [1, 1]} : vector<64x256xf32> to vector<64x128xf32>
    %57 = vector.extract_strided_slice %55 {offsets = [0, 128], sizes = [64, 128], strides = [1, 1]} : vector<64x256xf32> to vector<64x128xf32>
    %c0_22 = arith.constant 0 : index
    %c0_23 = arith.constant 0 : index
    %58 = vector.load %arg1[%c0_22, %c0_23] : memref<64x64xbf16, #tpu.memory_space<vmem>>, vector<64x64xbf16>
    %59 = arith.truncf %56 : vector<64x128xf32> to vector<64x128xbf16>
    %cst_24 = arith.constant dense<0.000000e+00> : vector<64x128xf32>
    %60 = tpu.matmul %58, %59, %cst_24 {dimension_numbers = #tpu.dot_dimension_numbers<[1], [0], [0], [1], [0, 0, 1, 1], [], []>} : vector<64x64xbf16>, vector<64x128xbf16>, vector<64x128xf32> -> vector<64x128xf32>
    %61 = arith.addf %60, %57 : vector<64x128xf32>
    %62 = vector.broadcast %49 : vector<1x128xf32> to vector<64x128xf32>
    %63 = arith.addf %61, %62 : vector<64x128xf32>
    %64 = arith.mulf %63, %63 : vector<64x128xf32>
    %65 = tpu.concatenate %63, %64 in 1 : vector<64x128xf32>, vector<64x128xf32> -> vector<64x256xf32>
    %cst_25 = arith.constant dense<0.000000e+00> : vector<1x256xf32>
    %66 = tpu.matmul %8, %65, %cst_25 {dimension_numbers = #tpu.dot_dimension_numbers<[1], [0], [0], [1], [0, 0, 1, 1], [], []>} : vector<1x64xf32>, vector<64x256xf32>, vector<1x256xf32> -> vector<1x256xf32>
    %67 = vector.extract_strided_slice %66 {offsets = [0, 0], sizes = [1, 128], strides = [1, 1]} : vector<1x256xf32> to vector<1x128xf32>
    %cst_26 = arith.constant 1.562500e-02 : f32
    %68 = vector.broadcast %cst_26 : f32 to vector<1x128xf32>
    %69 = arith.mulf %67, %68 : vector<1x128xf32>
    %70 = vector.extract_strided_slice %66 {offsets = [0, 128], sizes = [1, 128], strides = [1, 1]} : vector<1x256xf32> to vector<1x128xf32>
    %cst_27 = arith.constant 1.562500e-02 : f32
    %71 = vector.broadcast %cst_27 : f32 to vector<1x128xf32>
    %72 = arith.mulf %70, %71 : vector<1x128xf32>
    %73 = arith.mulf %69, %69 : vector<1x128xf32>
    %74 = arith.subf %72, %73 : vector<1x128xf32>
    %cst_28 = arith.constant 0.000000e+00 : f32
    %75 = vector.broadcast %cst_28 : f32 to vector<1x128xf32>
    %76 = arith.maximumf %74, %75 : vector<1x128xf32>
    %cst_29 = arith.constant 9.99999974E-6 : f32
    %77 = vector.broadcast %cst_29 : f32 to vector<1x128xf32>
    %78 = arith.addf %76, %77 : vector<1x128xf32>
    %79 = math.rsqrt %78 : vector<1x128xf32>
    %80 = arith.mulf %50, %79 : vector<1x128xf32>
    %81 = arith.mulf %69, %80 : vector<1x128xf32>
    %82 = arith.subf %51, %81 : vector<1x128xf32>
    %83 = vector.broadcast %80 : vector<1x128xf32> to vector<64x128xf32>
    %84 = arith.mulf %63, %83 : vector<64x128xf32>
    %85 = vector.broadcast %82 : vector<1x128xf32> to vector<64x128xf32>
    %86 = arith.addf %84, %85 : vector<64x128xf32>
    %cst_30 = arith.constant 0.000000e+00 : f32
    %87 = vector.broadcast %cst_30 : f32 to vector<64x128xf32>
    %88 = arith.maximumf %86, %87 : vector<64x128xf32>
    %c0_31 = arith.constant 0 : index
    %c0_32 = arith.constant 0 : index
    %89 = vector.load %arg2[%c0_31, %c0_32] : memref<8x64xf32, #tpu.memory_space<vmem>>, vector<8x64xf32>
    %90 = vector.shape_cast %88 : vector<64x128xf32> to vector<1x64x128xf32>
    %91 = vector.shape_cast %89 : vector<8x64xf32> to vector<8x64x1xf32>
    %92 = vector.broadcast %90 : vector<1x64x128xf32> to vector<8x64x128xf32>
    %93 = vector.broadcast %91 : vector<8x64x1xf32> to vector<8x64x128xf32>
    %94 = arith.addf %92, %93 : vector<8x64x128xf32>
    %cst_33 = arith.constant dense<0xFF800000> : vector<8x128xf32>
    %95 = vector.multi_reduction <maximumf>, %94, %cst_33 [1] : vector<8x64x128xf32> to vector<8x128xf32>
    %96 = arith.truncf %95 : vector<8x128xf32> to vector<8x128xbf16>
    %c3 = arith.constant 3 : index
    %c0_34 = arith.constant 0 : index
    %c0_35 = arith.constant 0 : index
    %97 = vector.load %arg3[%c3, %c0_34, %c0_35] : memref<4x128x256xbf16, #tpu.memory_space<vmem>>, vector<1x128x256xbf16>
    %98 = vector.shape_cast %97 : vector<1x128x256xbf16> to vector<128x256xbf16>
    %cst_36 = arith.constant dense<0.000000e+00> : vector<8x256xf32>
    %99 = tpu.matmul %96, %98, %cst_36 {dimension_numbers = #tpu.dot_dimension_numbers<[1], [0], [0], [1], [0, 0, 1, 1], [], []>} : vector<8x128xbf16>, vector<128x256xbf16>, vector<8x256xf32> -> vector<8x256xf32>
    %100 = vector.extract_strided_slice %0 {offsets = [7, 0], sizes = [1, 256], strides = [1, 1]} : vector<9x256xf32> to vector<1x256xf32>
    %101 = vector.broadcast %100 : vector<1x256xf32> to vector<8x256xf32>
    %102 = arith.addf %99, %101 : vector<8x256xf32>
    %cst_37 = arith.constant 0.000000e+00 : f32
    %103 = vector.broadcast %cst_37 : f32 to vector<8x256xf32>
    %104 = arith.maximumf %102, %103 : vector<8x256xf32>
    %105 = arith.truncf %104 : vector<8x256xf32> to vector<8x256xbf16>
    %c0_38 = arith.constant 0 : index
    %c0_39 = arith.constant 0 : index
    %106 = vector.load %arg4[%c0_38, %c0_39] : memref<256x128xbf16, #tpu.memory_space<vmem>>, vector<256x128xbf16>
    %cst_40 = arith.constant dense<0.000000e+00> : vector<8x128xf32>
    %107 = tpu.matmul %105, %106, %cst_40 {dimension_numbers = #tpu.dot_dimension_numbers<[1], [0], [0], [1], [0, 0, 1, 1], [], []>} : vector<8x256xbf16>, vector<256x128xbf16>, vector<8x128xf32> -> vector<8x128xf32>
    %108 = vector.extract_strided_slice %0 {offsets = [8, 0], sizes = [1, 128], strides = [1, 1]} : vector<9x256xf32> to vector<1x128xf32>
    %109 = vector.broadcast %108 : vector<1x128xf32> to vector<8x128xf32>
    %110 = arith.addf %107, %109 : vector<8x128xf32>
    %c0_41 = arith.constant 0 : index
    %c0_42 = arith.constant 0 : index
    %111 = vector.load %arg6[%c0_41, %c0_42] : memref<8x128xf32, #tpu.memory_space<vmem>>, vector<8x128xf32>
    tpu.vector_store %arg6[%c0_41, %c0_42], %110 {strides = array<i32>} : memref<8x128xf32, #tpu.memory_space<vmem>>, vector<8x128xf32>,
    return
  }
}

</mosaic_0001>

<bundles_post_ra>
// kernel: mnistsp_forward.1
= control target key start
LH: loop header
LB: loop body
LE: loop exit
PB: predicated region body
PF: predicated region fallthrough
CT: control target
= control target key end

     0   :  { %v2179_v28 = vmov 0   ;;  %v51_v29 = vlaneseq  ;;  %vm398_vm0 = vcmask 523264   ;;  %vm1504_vm1 = vcmask 1041409   ;;  %s3000_s3 = inlined_call_operand.vmem [shape: bf16[4,128,256], index: 3, kind: input, shape index: {}]   ;;  %s3001_s0 = inlined_call_operand.vmem [shape: bf16[64,128], index: 0, kind: input, shape index: {}]   ;;  %s3002_s5 = inlined_call_operand.vmem [shape: f32[9,256], index: 5, kind: input, shape index: {}]   ;;  %s3003_s1 = inlined_call_operand.vmem [shape: bf16[64,64], index: 1, kind: input, shape index: {}]   ;;  %s3004_s2 = inlined_call_operand.vmem [shape: f32[8,64], index: 2, kind: input, shape index: {}]   ;;  %s3005_s4 = inlined_call_operand.vmem [shape: bf16[256,128], index: 4, kind: input, shape index: {}]   ;;  %s3006_s6 = inlined_call_operand.vmem [shape: f32[8,128], index: 6, kind: output, shape index: {}]  }
   0x1   :  { %v2070_v0 = vld [vmem:[%s3000_s3 + $0x70] ss:$8 sps:$4 sm:$0xff]   ;;  %v2071_v1 = vld [vmem:[%s3000_s3 + $0x60] ss:$8 sps:$4 sm:$0xff]   ;;  %v2082_v6 = vld [vmem:[%s3000_s3 + $0xf4] ss:$8 sps:$4 sm:$0xff]   ;;  %325 = vmatprep.mubr.bf16.mxu1 %v2179_v28 }
   0x2   :  { %2011 = vmatprep.subr.bf16.mxu0 %v2070_v0  ;;  %v2072_v2 = vld [vmem:[%s3000_s3 + $0x50] ss:$8 sps:$4 sm:$0xff]   ;;  %v2073_v3 = vld [vmem:[%s3000_s3 + $0x40] ss:$8 sps:$4 sm:$0xff]   ;;  %293 = vmatprep.subr.bf16.mxu1 %v2082_v6  ;;  %v2085_v8 = vld [vmem:[%s3000_s3 + $0xe4] ss:$8 sps:$4 sm:$0xff]  }
   0x3   :  { %2012 = vmatpush3.bf16.msra.mxu0 %v2070_v0  ;;  %v2078_v4 = vld [vmem:[%s3001_s0] sm:$0xff]   ;;  %v2074_v5 = vld [vmem:[%s3000_s3 + $0x30] ss:$8 sps:$4 sm:$0xff]   ;;  %v2088_v11 = vld [vmem:[%s3000_s3 + $0xd4] ss:$8 sps:$4 sm:$0xff]   ;;  %v2302_v30 = vshrl.u32 %v51_v29, 7 }
   0x4   :  { %2013 = vmatprep.subr.bf16.mxu0 %v2071_v1  ;;  %2027 = vmatprep.mubr.bf16.mxu0 %v2078_v4  ;;  %v2084_v7 = vld [vmem:[%s3000_s3 + $0xf0] ss:$8 sps:$4 sm:$0xff]   ;;  %v2075_v9 = vld [vmem:[%s3000_s3 + $0x20] ss:$8 sps:$4 sm:$0xff]   ;;  %v2091_v14 = vld [vmem:[%s3000_s3 + $0xc4] ss:$8 sps:$4 sm:$0xff]  }
   0x5   :  { %294 = vmatpush1.bf16.msra.mxu1 %v2084_v7  ;;  %v2087_v10 = vld [vmem:[%s3000_s3 + $0xe0] ss:$8 sps:$4 sm:$0xff]   ;;  %v2076_v12 = vld [vmem:[%s3000_s3 + $0x10] ss:$8 sps:$4 sm:$0xff]   ;;  %v2094_v17 = vld [vmem:[%s3000_s3 + $0xb4] ss:$8 sps:$4 sm:$0xff]  }
   0x6   :  { %295 = vmatprep.subr.bf16.mxu1 %v2085_v8  ;;  %v2090_v13 = vld [vmem:[%s3000_s3 + $0xd0] ss:$8 sps:$4 sm:$0xff]   ;;  %v2093_v15 = vld [vmem:[%s3000_s3 + $0xc0] ss:$8 sps:$4 sm:$0xff]   ;;  %v2097_v19 = vld [vmem:[%s3000_s3 + $0xa4] ss:$8 sps:$4 sm:$0xff]  }
   0x7   :  { %2014 = vmatpush3.bf16.msra.mxu0 %v2071_v1  ;;  %v2077_v16 = vld [vmem:[%s3000_s3] ss:$8 sps:$4 sm:$0xff]   ;;  %v2096_v18 = vld [vmem:[%s3000_s3 + $0xb0] ss:$8 sps:$4 sm:$0xff]   ;;  %v2100_v24 = vld [vmem:[%s3000_s3 + $0x94] ss:$8 sps:$4 sm:$0xff]  }
   0x8   :  { %2015 = vmatprep.subr.bf16.mxu0 %v2072_v2  ;;  %v2079_v20 = vld [vmem:[%s3001_s0 + $0x8] sm:$0xff]   ;;  %v2080_v21 = vld [vmem:[%s3001_s0 + $0x10] sm:$0xff]   ;;  %v2081_v22 = vld [vmem:[%s3001_s0 + $0x18] sm:$0xff]   ;;  %v53_v32 = vsub.s32 0, %v2302_v30  ;;  %vm1506_vm2 = vcmask 1042434   ;;  %vm1508_vm3 = vcmask 1043459  }
   0x9   :  { %296 = vmatpush1.bf16.msra.mxu1 %v2087_v10  ;;  %v2099_v23 = vld [vmem:[%s3000_s3 + $0xa0] ss:$8 sps:$4 sm:$0xff]   ;;  %v2102_v25 = vld [vmem:[%s3000_s3 + $0x90] ss:$8 sps:$4 sm:$0xff]   ;;  %v2103_v26 = vld [vmem:[%s3000_s3 + $0x84] ss:$8 sps:$4 sm:$0xff]  }
   0xa   :  { %297 = vmatprep.subr.bf16.mxu1 %v2088_v11  ;;  %v2105_v27 = vld [vmem:[%s3000_s3 + $0x80] ss:$8 sps:$4 sm:$0xff]   ;;  %v2334_v11 = vld [vmem:[%s3003_s1 + $0x10] sm:$0xff]   ;;  %vm1510_vm4 = vcmask 1044484   ;;  %vm1512_vm5 = vcmask 1045509   ;;  %vm1514_vm6 = vcmask 1046534  }
   0xb   :  { %2016 = vmatpush3.bf16.msra.mxu0 %v2072_v2  ;;  %v2308_v33 = vld [vmem:[%s3002_s5] sm:$0xff]  ;;  %v2329_v10 = vld [vmem:[%s3003_s1 + $0x8] sm:$0xff]   ;;  %vm1516_vm7 = vcmask 1047559  }
   0xc   :  { %2017 = vmatprep.subr.bf16.mxu0 %v2073_v3  ;;  %v54_v36 = vrot.slane %v2308_v33, %v53_v32  ;;  %v2320_v54 = vld [vmem:[%s3003_s1] sm:$0xff]  }
   0xd   :  { %298 = vmatpush1.bf16.msra.mxu1 %v2090_v13  ;;  %v2180_v13 = vmov 0.0  }
   0xe   :  { %299 = vmatprep.subr.bf16.mxu1 %v2091_v14 }
   0xf   :  { %2018 = vmatpush3.bf16.msra.mxu0 %v2073_v3 }
  0x10   :  { %2019 = vmatprep.subr.bf16.mxu0 %v2074_v5 }
  0x11   :  { %300 = vmatpush1.bf16.msra.mxu1 %v2093_v15 }
  0x12   :  { %301 = vmatprep.subr.bf16.mxu1 %v2094_v17 }
  0x13   :  { %2020 = vmatpush3.bf16.msra.mxu0 %v2074_v5 }
  0x14   :  { %2021 = vmatprep.subr.bf16.mxu0 %v2075_v9 }
  0x15   :  { %302 = vmatpush1.bf16.msra.mxu1 %v2096_v18 }
  0x16   :  { %303 = vmatprep.subr.bf16.mxu1 %v2097_v19  ;;  %v478_v19 = vsub.s32 1, %v2302_v30 }
  0x17   :  { %2022 = vmatpush3.bf16.msra.mxu0 %v2075_v9 }
  0x18   :  { %2023 = vmatprep.subr.bf16.mxu0 %v2076_v12 }
  0x19   :  { %304 = vmatpush1.bf16.msra.mxu1 %v2099_v23 }
  0x1a   :  { %305 = vmatprep.subr.bf16.mxu1 %v2100_v24  ;;  %v479_v24 = vrot.slane %v2308_v33, %v478_v19 }
  0x1b   :  { %2024 = vmatpush3.bf16.msra.mxu0 %v2076_v12  ;;  %v2343_v12 = vld [vmem:[%s3003_s1 + $0x18] sm:$0xff]  }
  0x1c   :  { %2025 = vmatprep.subr.bf16.mxu0 %v2077_v16 }
  0x1d   :  { %306 = vmatpush1.bf16.msra.mxu1 %v2102_v25 }
  0x1e   :  { %307 = vmatprep.subr.bf16.mxu1 %v2103_v26 }
  0x1f   :  { %2026 = vmatpush3.bf16.msra.mxu0 %v2077_v16 }
  0x21   :  { %308 = vmatpush1.bf16.msra.mxu1 %v2105_v27 }
  0x22   :  { %2028 = vmatmul.mubr.bf16.vlgmr.msra.gmra.mxu0 %v2079_v20 }
  0x23   :  { %2031 = vmatprep.mubr.bf16.mxu0 %v2080_v21 }
  0x2a   :  { %2032 = vmatmul.mubr.bf16.gmra.mxu0 %v2081_v22 }
  0x2b   :  { %2043 = vmatprep.mubr.msk.bf16.mxu0 %vm398_vm0, %v2320_v54 }
  0xe2   :  { %v2029_v31 = vpop.f32.mrf.mxu0 }
  0xe3   :  { %v170_v45 = vadd.f32 %v2029_v31, %v54_v36 }
  0xe4   :  { %v161_v34 = vpop.f32.mrf.mxu0 }
  0xe5   :  { %v162_v38 = vadd.f32 %v161_v34, %v54_v36 }
  0xe6   :  { %v2030_v35 = vpop.f32.mrf.mxu0 }
  0xe7   :  { %v173_v43 = vadd.f32 %v2030_v35, %v54_v36 }
  0xe8   :  { %v164_v37 = vpop.f32.mrf.mxu0 }
  0xe9   :  { %v165_v39 = vadd.f32 %v164_v37, %v54_v36  ;;  %v193_v46 = vpack.c.bf16 %v173_v43, %v170_v45 }
  0xea   :  { %v2033_v40 = vpop.f32.mrf.mxu0 }
  0xeb   :  { %v192_v41 = vpack.c.bf16 %v165_v39, %v162_v38  ;;  %v186_v51 = vadd.f32 %v2033_v40, %v54_v36 }
  0xec   :  { %v177_v42 = vpop.f32.mrf.mxu0 }
  0xed   :  { %326 = vmatmul.mubr.bf16.vlgmr.msra.gmra.mxu1 %v192_v41  ;;  %v178_v48 = vadd.f32 %v177_v42, %v54_v36 }
  0xee   :  { %335 = vmatprep.mubr.bf16.mxu1 %v2179_v28  ;;  %v2034_v44 = vpop.f32.mrf.mxu0 }
  0xef   :  { %v189_v52 = vadd.f32 %v2034_v44, %v54_v36 }
  0xf0   :  { %v180_v47 = vpop.f32.mrf.mxu0 }
  0xf1   :  { %v181_v49 = vadd.f32 %v180_v47, %v54_v36  ;;  %v195_v53 = vpack.c.bf16 %v189_v52, %v186_v51 }
  0xf3   :  { %v194_v50 = vpack.c.bf16 %v181_v49, %v178_v48 }
  0xf5   :  { %336 = vmatmul.mubr.bf16.gmra.mxu1 %v193_v46 }
  0xf6   :  { %345 = vmatprep.mubr.bf16.mxu1 %v2179_v28 }
  0xfd   :  { %346 = vmatmul.mubr.bf16.gmra.mxu1 %v194_v50 }
  0xfe   :  { %355 = vmatprep.mubr.bf16.mxu1 %v2179_v28 }
 0x105   :  { %356 = vmatmul.mubr.bf16.gmra.mxu1 %v195_v53  ;;  %v2181_v53 = vmov 1.0  }
 0x106   :  { %754 = vmatprep.mubr.bf16.mxu1 %v2179_v28 }
 0x1ad   :  { %v327_v55 = vpop.f32.mrf.mxu1 }
 0x1af   :  { %v2324_v56 = vpop.f32.mrf.mxu1 }
 0x1b1   :  { %v331_v57 = vpop.f32.mrf.mxu1 }
 0x1b2   :  { %v374_v9 = vpack.c.bf16 %v331_v57, %v327_v55  ;;  %v2112_v55 = vld [vmem:[%s3000_s3 + $0x174] ss:$8 sps:$4 sm:$0xff]   ;;  %v2115_v57 = vld [vmem:[%s3000_s3 + $0x164] ss:$8 sps:$4 sm:$0xff]  }
 0x1b3   :  { %v333_v58 = vpop.f32.mrf.mxu1  ;;  %722 = vmatprep.subr.bf16.mxu1 %v2112_v55 }
 0x1b5   :  { %v337_v59 = vpop.f32.mrf.mxu1 }
 0x1b7   :  { %v339_v60 = vpop.f32.mrf.mxu1 }
 0x1b9   :  { %v341_v61 = vpop.f32.mrf.mxu1 }
 0x1ba   :  { %v375_v8 = vpack.c.bf16 %v341_v61, %v337_v59  ;;  %v2116_v59 = vld [vmem:[%s3000_s3 + $0x150] ss:$8 sps:$4 sm:$0xff]   ;;  %v2119_v61 = vld [vmem:[%s3000_s3 + $0x140] ss:$8 sps:$4 sm:$0xff]  }
 0x1bb   :  { %v343_v62 = vpop.f32.mrf.mxu1 }
 0x1bd   :  { %v347_v63 = vpop.f32.mrf.mxu1 }
 0x1bf   :  { %v349_v0 = vpop.f32.mrf.mxu1 }
 0x1c1   :  { %v351_v1 = vpop.f32.mrf.mxu1 }
 0x1c2   :  { %v376_v7 = vpack.c.bf16 %v351_v1, %v347_v63  ;;  %v2122_v63 = vld [vmem:[%s3000_s3 + $0x130] ss:$8 sps:$4 sm:$0xff]   ;;  %v2125_v1 = vld [vmem:[%s3000_s3 + $0x120] ss:$8 sps:$4 sm:$0xff]  }
 0x1c3   :  { %v353_v2 = vpop.f32.mrf.mxu1 }
 0x1c5   :  { %v357_v3 = vpop.f32.mrf.mxu1 }
 0x1c7   :  { %v359_v4 = vpop.f32.mrf.mxu1 }
 0x1c9   :  { %v361_v5 = vpop.f32.mrf.mxu1 }
 0x1ca   :  { %v377_v6 = vpack.c.bf16 %v361_v5, %v357_v3  ;;  %v2128_v3 = vld [vmem:[%s3000_s3 + $0x110] ss:$8 sps:$4 sm:$0xff]   ;;  %v2131_v5 = vld [vmem:[%s3000_s3 + $0x100] ss:$8 sps:$4 sm:$0xff]  }
 0x1cb   :  { %v363_v22 = vpop.f32.mrf.mxu1 }
 0x1cc   :  { %2035 = vmatprep.subr.bf16.mxu0 %v377_v6 }
 0x1cd   :  { %2036 = vmatpush3.bf16.msra.mxu0 %v377_v6 }
 0x1ce   :  { %2037 = vmatprep.subr.bf16.mxu0 %v376_v7 }
 0x1d1   :  { %2038 = vmatpush3.bf16.msra.mxu0 %v376_v7 }
 0x1d2   :  { %2039 = vmatprep.subr.bf16.mxu0 %v375_v8 }
 0x1d5   :  { %2040 = vmatpush3.bf16.msra.mxu0 %v375_v8 }
 0x1d6   :  { %2041 = vmatprep.subr.bf16.mxu0 %v374_v9 }
 0x1d9   :  { %2042 = vmatpush3.bf16.msra.mxu0 %v374_v9 }
 0x1dc   :  { %2044 = vmatmul.mubr.msk.bf16.vlgmr.msra.gmra.mxu0 %vm398_vm0, %v2329_v10 }
 0x1dd   :  { %2047 = vmatprep.mubr.msk.bf16.mxu0 %vm398_vm0, %v2334_v11 }
 0x1e4   :  { %2048 = vmatmul.mubr.msk.bf16.gmra.mxu0 %vm398_vm0, %v2343_v12 }
 0x1e5   :  { %563 = vmatprep.mubr.f32.mxu0 %v2180_v13 }
 0x29c   :  { %v2045_v14 = vpop.f32.mrf.mxu0 }
 0x29d   :  { %v454_v38 = vadd.f32 %v2045_v14, %v339_v60  ;;  %v2121_v60 = vld [vmem:[%s3000_s3 + $0x144] ss:$8 sps:$4 sm:$0xff]  }
 0x29e   :  { %v445_v15 = vpop.f32.mrf.mxu0 }
 0x29f   :  { %v2370_v44 = vadd.f32 %v479_v24, %v454_v38  ;;  %v446_v45 = vadd.f32 %v445_v15, %v2324_v56  ;;  %v2110_v56 = vld [vmem:[%s3000_s3 + $0x170] ss:$8 sps:$4 sm:$0xff]  }
 0x2a0   :  { %v2046_v16 = vpop.f32.mrf.mxu0  ;;  %723 = vmatpush1.bf16.msra.mxu1 %v2110_v56 }
 0x2a1   :  { %v457_v35 = vadd.f32 %v2046_v16, %v343_v62  ;;  %v2381_v49 = vadd.f32 %v479_v24, %v446_v45  ;;  %v490_v50 = vmul.f32 %v2370_v44, %v2370_v44  ;;  %724 = vmatprep.subr.bf16.mxu1 %v2115_v57  ;;  %v2124_v62 = vld [vmem:[%s3000_s3 + $0x134] ss:$8 sps:$4 sm:$0xff]  }
 0x2a2   :  { %v448_v17 = vpop.f32.mrf.mxu0 }
 0x2a3   :  { %v2365_v41 = vadd.f32 %v479_v24, %v457_v35  ;;  %v449_v42 = vadd.f32 %v448_v17, %v333_v58  ;;  %v488_v52 = vmul.f32 %v2381_v49, %v2381_v49  ;;  %v2113_v58 = vld [vmem:[%s3000_s3 + $0x160] ss:$8 sps:$4 sm:$0xff]  }
 0x2a4   :  { %v2049_v18 = vpop.f32.mrf.mxu0  ;;  %725 = vmatpush1.bf16.msra.mxu1 %v2113_v58 }
 0x2a5   :  { %v470_v21 = vadd.f32 %v2049_v18, %v359_v4  ;;  %v2376_v47 = vadd.f32 %v479_v24, %v449_v42  ;;  %v491_v48 = vmul.f32 %v2365_v41, %v2365_v41  ;;  %v2133_v4 = vld [vmem:[%s3000_s3 + $0x104] ss:$8 sps:$4 sm:$0xff]  }
 0x2a6   :  { %v461_v20 = vpop.f32.mrf.mxu0 }
 0x2a7   :  { %v2352_v27 = vadd.f32 %v479_v24, %v470_v21  ;;  %v462_v29 = vadd.f32 %v461_v20, %v349_v0  ;;  %v489_v51 = vmul.f32 %v2376_v47, %v2376_v47  ;;  %v2127_v0 = vld [vmem:[%s3000_s3 + $0x124] ss:$8 sps:$4 sm:$0xff]  }
 0x2a8   :  { %v2050_v23 = vpop.f32.mrf.mxu0 }
 0x2a9   :  { %v473_v25 = vadd.f32 %v2050_v23, %v363_v22  ;;  %v2360_v39 = vadd.f32 %v479_v24, %v462_v29  ;;  %v494_v40 = vmul.f32 %v2352_v27, %v2352_v27  ;;  %v591_v23 = vsub.s32 2, %v2302_v30 }
 0x2aa   :  { %v464_v26 = vpop.f32.mrf.mxu0  ;;  %v603_v29 = vsub.s32 3, %v2302_v30 }
 0x2ab   :  { %v2354_v31 = vadd.f32 %v479_v24, %v473_v25  ;;  %v465_v34 = vadd.f32 %v464_v26, %v353_v2  ;;  %v492_v46 = vmul.f32 %v2360_v39, %v2360_v39  ;;  %v2130_v2 = vld [vmem:[%s3000_s3 + $0x114] ss:$8 sps:$4 sm:$0xff]  }
 0x2ad   :  { %v2356_v36 = vadd.f32 %v479_v24, %v465_v34  ;;  %v495_v37 = vmul.f32 %v2354_v31, %v2354_v31 }
 0x2af   :  { %515 = vmatprep.subr.mxu0 %v495_v37  ;;  %v493_v43 = vmul.f32 %v2356_v36, %v2356_v36 }
 0x2b0   :  { %516 = vmatpush1.msra.mxu0 %v2354_v31 }
 0x2b1   :  { %517 = vmatprep.subr.mxu0 %v494_v40 }
 0x2b2   :  { %518 = vmatpush1.msra.mxu0 %v2352_v27 }
 0x2b3   :  { %519 = vmatprep.subr.mxu0 %v493_v43 }
 0x2b4   :  { %520 = vmatpush1.msra.mxu0 %v2356_v36 }
 0x2b5   :  { %521 = vmatprep.subr.mxu0 %v492_v46 }
 0x2b6   :  { %522 = vmatpush1.msra.mxu0 %v2360_v39 }
 0x2b7   :  { %523 = vmatprep.subr.mxu0 %v491_v48 }
 0x2b8   :  { %524 = vmatpush1.msra.mxu0 %v2365_v41 }
 0x2b9   :  { %525 = vmatprep.subr.mxu0 %v490_v50 }
 0x2ba   :  { %526 = vmatpush1.msra.mxu0 %v2370_v44 }
 0x2bb   :  { %527 = vmatprep.subr.mxu0 %v489_v51 }
 0x2bc   :  { %528 = vmatpush1.msra.mxu0 %v2376_v47 }
 0x2bd   :  { %529 = vmatprep.subr.mxu0 %v488_v52 }
 0x2be   :  { %530 = vmatpush1.msra.mxu0 %v2381_v49 }
 0x2bf   :  { %1874 = vmatmul.mubr.msk.f32.vlgmr.msra.gmra.mxu0 %vm398_vm0, %v2181_v53 }
 0x2c0   :  { %2059 = vmatprep.mubr.msk.bf16.mxu0 %vm398_vm0, %v2320_v54  ;;  %v2118_v54 = vld [vmem:[%s3000_s3 + $0x154] ss:$8 sps:$4 sm:$0xff]  }
 0x2c1   :  { %726 = vmatprep.subr.bf16.mxu1 %v2118_v54 }
 0x2c2   :  { %727 = vmatpush1.bf16.msra.mxu1 %v2116_v59 }
 0x2c3   :  { %728 = vmatprep.subr.bf16.mxu1 %v2121_v60 }
 0x2c6   :  { %729 = vmatpush1.bf16.msra.mxu1 %v2119_v61 }
 0x2c7   :  { %730 = vmatprep.subr.bf16.mxu1 %v2124_v62 }
 0x2ca   :  { %731 = vmatpush1.bf16.msra.mxu1 %v2122_v63 }
 0x2cb   :  { %732 = vmatprep.subr.bf16.mxu1 %v2127_v0 }
 0x2ce   :  { %733 = vmatpush1.bf16.msra.mxu1 %v2125_v1 }
 0x2cf   :  { %734 = vmatprep.subr.bf16.mxu1 %v2130_v2 }
 0x2d2   :  { %735 = vmatpush1.bf16.msra.mxu1 %v2128_v3 }
 0x2d3   :  { %736 = vmatprep.subr.bf16.mxu1 %v2133_v4 }
 0x2d6   :  { %737 = vmatpush1.bf16.msra.mxu1 %v2131_v5 }
 0x37f   :  { %v565_v6 = vpop.f32.mrf.mxu0 }
 0x380   :  { %v570_v7 = vmul.f32 0.015625, %v565_v6 }
 0x381   :  { %v567_v8 = vpop.f32.mrf.mxu0 }
 0x382   :  { %v572_v9 = vmul.f32 %v570_v7, %v570_v7  ;;  %v571_v14 = vmul.f32 0.015625, %v567_v8 }
 0x384   :  { %v573_v15 = vsub.f32 %v571_v14, %v572_v9 }
 0x386   :  { %v574_v16 = vmax.f32 %v573_v15, 0.0 }
 0x388   :  { %v575_v17 = vadd.f32 1e-05, %v574_v16 }
 0x38a   :  { %2174 = vrsqrt.f32 %v575_v17 }
 0x397   :  { %v2175_v18 = vpop.eup %2174 }
 0x398   :  { %v578_v20 = vrot.slane %v2175_v18, 6 }
 0x39a   :  { %v580_v21 = vmul.f32 %v578_v20, %v2308_v33 }
 0x39c   :  { %v582_v22 = vrot.slane %v580_v21, 2  ;;  %v592_v26 = vrot.slane %v580_v21, %v591_v23 }
 0x39e   :  { %v584_v24 = vmul.f32 %v582_v22, %v570_v7  ;;  %v593_v37 = vmul.f32 %v592_v26, %v2381_v49  ;;  %v594_v38 = vmul.f32 %v592_v26, %v2376_v47  ;;  %v595_v46 = vmul.f32 %v592_v26, %v2370_v44  ;;  %v1006_v22 = vld [vmem:[%s3004_s2] sm:$0xff] }
 0x39f   :  { %v596_v48 = vmul.f32 %v592_v26, %v2365_v41  ;;  %v597_v49 = vmul.f32 %v592_v26, %v2360_v39  ;;  %v598_v47 = vmul.f32 %v592_v26, %v2356_v36  ;;  %v599_v59 = vmul.f32 %v592_v26, %v2352_v27 }
 0x3a0   :  { %v586_v25 = vrot.slane %v584_v24, 5  ;;  %v600_v60 = vmul.f32 %v592_v26, %v2354_v31  ;;  %v1045_v24 = vrot.slane %v1006_v22, %v478_v19 }
 0x3a2   :  { %v588_v34 = vsub.f32 %v2308_v33, %v586_v25  ;;  %v1010_v25 = vrot.slane %v1006_v22, %v53_v32  ;;  %1047 = vbcast.lane.b32.xlu1 %v1045_v24, 256  ;;  %v866_v32 = vsub.s32 4, %v2302_v30 }
 0x3a4   :  { %v604_v35 = vrot.slane %v588_v34, %v603_v29  ;;  %1012 = vbcast.lane.b32.xlu0 %v1010_v25, 256 }
 0x3a6   :  { %v605_v40 = vadd.f32 %v604_v35, %v593_v37  ;;  %v606_v42 = vadd.f32 %v604_v35, %v594_v38  ;;  %v607_v51 = vadd.f32 %v604_v35, %v595_v46  ;;  %v608_v52 = vadd.f32 %v604_v35, %v596_v48  ;;  %1051 = vbcast.lane.b32.xlu1 %v1045_v24, 264 }
 0x3a7   :  { %v609_v58 = vadd.f32 %v604_v35, %v597_v49  ;;  %v610_v54 = vadd.f32 %v604_v35, %v598_v47  ;;  %v611_v62 = vadd.f32 %v604_v35, %v599_v59  ;;  %v612_v63 = vadd.f32 %v604_v35, %v600_v60 }
 0x3a8   :  { %v613_v43 = vmax.f32 %v605_v40, 0.0  ;;  %v614_v45 = vmax.f32 %v606_v42, 0.0  ;;  %v615_v55 = vmax.f32 %v607_v51, 0.0  ;;  %v616_v56 = vmax.f32 %v608_v52, 0.0  ;;  %1016 = vbcast.lane.b32.xlu0 %v1010_v25, 264 }
 0x3a9   :  { %v617_v44 = vmax.f32 %v609_v58, 0.0  ;;  %v618_v41 = vmax.f32 %v610_v54, 0.0  ;;  %v619_v39 = vmax.f32 %v611_v62, 0.0  ;;  %v620_v36 = vmax.f32 %v612_v63, 0.0 }
 0x3aa   :  { %v621_v50 = vpack.c.bf16 %v614_v45, %v613_v43  ;;  %v622_v57 = vpack.c.bf16 %v616_v56, %v615_v55 }
 0x3ab   :  { %v623_v61 = vpack.c.bf16 %v618_v41, %v617_v44  ;;  %v624_v0 = vpack.c.bf16 %v620_v36, %v619_v39 }
 0x3ac   :  { %755 = vmatmul.mubr.bf16.vlgmr.msra.gmra.mxu1 %v621_v50  ;;  %v867_v50 = vrot.slane %v2308_v33, %v866_v32 }
 0x3ad   :  { %764 = vmatprep.mubr.bf16.mxu1 %v2179_v28 }
 0x3b4   :  { %765 = vmatmul.mubr.bf16.gmra.mxu1 %v622_v57 }
 0x3b5   :  { %774 = vmatprep.mubr.bf16.mxu1 %v2179_v28 }
 0x3bc   :  { %775 = vmatmul.mubr.bf16.gmra.mxu1 %v623_v61 }
 0x3bd   :  { %784 = vmatprep.mubr.bf16.mxu1 %v2179_v28 }
 0x3c4   :  { %785 = vmatmul.mubr.bf16.gmra.mxu1 %v624_v0 }
 0x3c5   :  { %1632 = vmatprep.mubr.bf16.mxu1 %v2179_v28 }
 0x46c   :  { %v756_v1 = vpop.f32.mrf.mxu1 }
 0x46e   :  { %v2465_v2 = vpop.f32.mrf.mxu1 }
 0x470   :  { %v760_v3 = vpop.f32.mrf.mxu1 }
 0x471   :  { %v795_v21 = vpack.c.bf16 %v760_v3, %v756_v1 }
 0x472   :  { %v2467_v4 = vpop.f32.mrf.mxu1 }
 0x474   :  { %v766_v27 = vpop.f32.mrf.mxu1 }
 0x476   :  { %v2469_v31 = vpop.f32.mrf.mxu1 }
 0x478   :  { %v770_v5 = vpop.f32.mrf.mxu1 }
 0x479   :  { %v796_v20 = vpack.c.bf16 %v770_v5, %v766_v27  ;;  %v2622_v27 = vpop.permute.xlu1 %1047 }
 0x47a   :  { %v2471_v6 = vpop.f32.mrf.mxu1 }
 0x47c   :  { %v776_v7 = vpop.f32.mrf.mxu1 }
 0x47d   :  { %v2626_v5 = vpop.permute.xlu1 %1051 }
 0x47e   :  { %v2473_v8 = vpop.f32.mrf.mxu1 }
 0x480   :  { %v780_v9 = vpop.f32.mrf.mxu1 }
 0x481   :  { %v797_v18 = vpack.c.bf16 %v780_v9, %v776_v7 }
 0x482   :  { %v2475_v14 = vpop.f32.mrf.mxu1 }
 0x484   :  { %v786_v15 = vpop.f32.mrf.mxu1 }
 0x486   :  { %v2477_v28 = vpop.f32.mrf.mxu1 }
 0x488   :  { %v790_v16 = vpop.f32.mrf.mxu1 }
 0x489   :  { %v798_v17 = vpack.c.bf16 %v790_v16, %v786_v15 }
 0x48a   :  { %v792_v46 = vpop.f32.mrf.mxu1 }
 0x48b   :  { %2051 = vmatprep.subr.bf16.mxu0 %v798_v17 }
 0x48c   :  { %2052 = vmatpush3.bf16.msra.mxu0 %v798_v17 }
 0x48d   :  { %2053 = vmatprep.subr.bf16.mxu0 %v797_v18 }
 0x490   :  { %2054 = vmatpush3.bf16.msra.mxu0 %v797_v18 }
 0x491   :  { %2055 = vmatprep.subr.bf16.mxu0 %v796_v20 }
 0x494   :  { %2056 = vmatpush3.bf16.msra.mxu0 %v796_v20 }
 0x495   :  { %2057 = vmatprep.subr.bf16.mxu0 %v795_v21 }
 0x498   :  { %2058 = vmatpush3.bf16.msra.mxu0 %v795_v21 }
 0x49b   :  { %2060 = vmatmul.mubr.msk.bf16.vlgmr.msra.gmra.mxu0 %vm398_vm0, %v2329_v10  ;;  %v2495_v10 = vrot.slane %v1006_v22, %v591_v23  ;;  %v3007_v23 = vsub.s32 6, %v2302_v30 }
 0x49c   :  { %2063 = vmatprep.mubr.msk.bf16.mxu0 %vm398_vm0, %v2334_v11  ;;  %v2501_v11 = vrot.slane %v1006_v22, %v603_v29  ;;  %v2531_v29 = vsub.s32 7, %v2302_v30 }
 0x49d   :  { %1086 = vbcast.lane.b32.xlu1 %v2495_v10, 264  ;;  %1082 = vbcast.lane.b32.xlu0 %v2495_v10, 256  ;;  %v2526_v26 = vrot.slane %v1006_v22, %v3007_v23 }
 0x49e   :  { %3012 = vst [vmem:[#allocation2_spill] sm:$0xff] %v2531_v29  ;;  %v2536_v34 = vrot.slane %v1006_v22, %v2531_v29 }
 0x4a1   :  { %1055 = vbcast.lane.b32.xlu1 %v1045_v24, 272  ;;  %1020 = vbcast.lane.b32.xlu0 %v1010_v25, 272 }
 0x4a3   :  { %2064 = vmatmul.mubr.msk.bf16.gmra.mxu0 %vm398_vm0, %v2343_v12  ;;  %v2508_v12 = vrot.slane %v1006_v22, %v866_v32 }
 0x4a4   :  { %948 = vmatprep.mubr.f32.mxu0 %v2180_v13  ;;  %v3008_v13 = vsub.s32 5, %v2302_v30 }
 0x4a5   :  { %1121 = vbcast.lane.b32.xlu1 %v2501_v11, 264  ;;  %1117 = vbcast.lane.b32.xlu0 %v2501_v11, 256 }
 0x4a6   :  { %v2517_v19 = vrot.slane %v1006_v22, %v3008_v13 }
 0x4a9   :  { %1152 = vbcast.lane.b32.xlu1 %v2508_v12, 256  ;;  %1090 = vbcast.lane.b32.xlu0 %v2495_v10, 272 }
 0x4ad   :  { %1024 = vbcast.lane.b32.xlu1 %v1010_v25, 280  ;;  %1156 = vbcast.lane.b32.xlu0 %v2508_v12, 264 }
 0x4b1   :  { %1125 = vbcast.lane.b32.xlu1 %v2501_v11, 272  ;;  %1059 = vbcast.lane.b32.xlu0 %v1045_v24, 280 }
 0x4b5   :  { %1191 = vbcast.lane.b32.xlu1 %v2517_v19, 264  ;;  %1187 = vbcast.lane.b32.xlu0 %v2517_v19, 256 }
 0x4b9   :  { %1160 = vbcast.lane.b32.xlu1 %v2508_v12, 272  ;;  %1094 = vbcast.lane.b32.xlu0 %v2495_v10, 280 }
 0x4bd   :  { %1226 = vbcast.lane.b32.xlu1 %v2526_v26, 264  ;;  %1222 = vbcast.lane.b32.xlu0 %v2526_v26, 256 }
 0x4c1   :  { %1063 = vbcast.lane.b32.xlu1 %v1045_v24, 288  ;;  %1028 = vbcast.lane.b32.xlu0 %v1010_v25, 288 }
 0x4c5   :  { %1195 = vbcast.lane.b32.xlu1 %v2517_v19, 272  ;;  %1129 = vbcast.lane.b32.xlu0 %v2501_v11, 280 }
 0x4c9   :  { %1261 = vbcast.lane.b32.xlu1 %v2536_v34, 264  ;;  %1257 = vbcast.lane.b32.xlu0 %v2536_v34, 256 }
 0x4cd   :  { %1164 = vbcast.lane.b32.xlu1 %v2508_v12, 280  ;;  %1098 = vbcast.lane.b32.xlu0 %v2495_v10, 288 }
 0x4d1   :  { %1032 = vbcast.lane.b32.xlu1 %v1010_v25, 296  ;;  %1230 = vbcast.lane.b32.xlu0 %v2526_v26, 272 }
 0x4d5   :  { %1133 = vbcast.lane.b32.xlu1 %v2501_v11, 288  ;;  %1067 = vbcast.lane.b32.xlu0 %v1045_v24, 296 }
 0x4d9   :  { %1265 = vbcast.lane.b32.xlu1 %v2536_v34, 272  ;;  %1199 = vbcast.lane.b32.xlu0 %v2517_v19, 280 }
 0x4dd   :  { %1168 = vbcast.lane.b32.xlu1 %v2508_v12, 288  ;;  %1102 = vbcast.lane.b32.xlu0 %v2495_v10, 296 }
 0x4e1   :  { %1036 = vbcast.lane.b32.xlu1 %v1010_v25, 304  ;;  %1234 = vbcast.lane.b32.xlu0 %v2526_v26, 280 }
 0x4e5   :  { %1137 = vbcast.lane.b32.xlu1 %v2501_v11, 296  ;;  %1071 = vbcast.lane.b32.xlu0 %v1045_v24, 304 }
 0x4e9   :  { %1269 = vbcast.lane.b32.xlu1 %v2536_v34, 280  ;;  %1203 = vbcast.lane.b32.xlu0 %v2517_v19, 288 }
 0x4ed   :  { %1172 = vbcast.lane.b32.xlu1 %v2508_v12, 296  ;;  %1106 = vbcast.lane.b32.xlu0 %v2495_v10, 304 }
 0x4f1   :  { %1040 = vbcast.lane.b32.xlu1 %v1010_v25, 312  ;;  %1238 = vbcast.lane.b32.xlu0 %v2526_v26, 288 }
 0x4f5   :  { %1141 = vbcast.lane.b32.xlu1 %v2501_v11, 304  ;;  %1075 = vbcast.lane.b32.xlu0 %v1045_v24, 312 }
 0x4f9   :  { %1273 = vbcast.lane.b32.xlu1 %v2536_v34, 288  ;;  %1207 = vbcast.lane.b32.xlu0 %v2517_v19, 296 }
 0x4fd   :  { %1176 = vbcast.lane.b32.xlu1 %v2508_v12, 304  ;;  %1110 = vbcast.lane.b32.xlu0 %v2495_v10, 312 }
 0x501   :  { %1145 = vbcast.lane.b32.xlu1 %v2501_v11, 312  ;;  %1242 = vbcast.lane.b32.xlu0 %v2526_v26, 296 }
 0x505   :  { %1277 = vbcast.lane.b32.xlu1 %v2536_v34, 296  ;;  %1211 = vbcast.lane.b32.xlu0 %v2517_v19, 304 }
 0x509   :  { %1246 = vbcast.lane.b32.xlu1 %v2526_v26, 304  ;;  %1180 = vbcast.lane.b32.xlu0 %v2508_v12, 312 }
 0x50d   :  { %1281 = vbcast.lane.b32.xlu1 %v2536_v34, 304  ;;  %1215 = vbcast.lane.b32.xlu0 %v2517_v19, 312 }
 0x50f   :  { %v2630_v7 = vpop.permute.xlu1 %1086 }
 0x511   :  { %1285 = vbcast.lane.b32.xlu1 %v2536_v34, 312  ;;  %1250 = vbcast.lane.b32.xlu0 %v2526_v26, 312  ;;  %v2136_v26 = vld [vmem:[%s3000_s3 + $0x1f4] ss:$8 sps:$4 sm:$0xff]   ;;  %v2134_v34 = vld [vmem:[%s3000_s3 + $0x1f0] ss:$8 sps:$4 sm:$0xff]  }
 0x512   :  { %1600 = vmatprep.subr.bf16.mxu1 %v2136_v26  ;;  %v2163_v26 = vld [vmem:[%s3005_s4 + $0x28] sm:$0xff]  }
 0x513   :  { %v2634_v9 = vpop.permute.xlu1 %1055  ;;  %1601 = vmatpush1.bf16.msra.mxu1 %v2134_v34  ;;  %v2164_v34 = vld [vmem:[%s3005_s4 + $0x60] sm:$0xff]  }
 0x517   :  { %v2638_v15 = vpop.permute.xlu1 %1121 }
 0x55b   :  { %v2061_v35 = vpop.f32.mrf.mxu0 }
 0x55c   :  { %v842_v54 = vadd.f32 %v2061_v35, %v2469_v31  ;;  %v2624_v31 = vpop.permute.xlu0 %1012 }
 0x55d   :  { %v833_v37 = vpop.f32.mrf.mxu0 }
 0x55e   :  { %v2593_v62 = vadd.f32 %v867_v50, %v842_v54  ;;  %v834_v63 = vadd.f32 %v833_v37, %v2465_v2  ;;  %v2154_v54 = vld [vmem:[%s3000_s3 + $0x194] ss:$8 sps:$4 sm:$0xff]  }
 0x55f   :  { %v2062_v38 = vpop.f32.mrf.mxu0 }
 0x560   :  { %v845_v57 = vadd.f32 %v2062_v38, %v2471_v6  ;;  %v2606_v1 = vadd.f32 %v867_v50, %v834_v63  ;;  %v878_v2 = vmul.f32 %v2593_v62, %v2593_v62  ;;  %v2628_v6 = vpop.permute.xlu0 %1016  ;;  %v2139_v38 = vld [vmem:[%s3000_s3 + $0x1e4] ss:$8 sps:$4 sm:$0xff]   ;;  %v2161_v63 = vld [vmem:[%s3005_s4 + $0x30] sm:$0xff]  }
 0x561   :  { %v836_v40 = vpop.f32.mrf.mxu0  ;;  %1602 = vmatprep.subr.bf16.mxu1 %v2139_v38  ;;  %v2155_v38 = vld [vmem:[%s3000_s3 + $0x180] ss:$8 sps:$4 sm:$0xff]  }
 0x562   :  { %v2586_v59 = vadd.f32 %v867_v50, %v845_v57  ;;  %v837_v60 = vadd.f32 %v836_v40, %v2467_v4  ;;  %v876_v4 = vmul.f32 %v2606_v1, %v2606_v1  ;;  %v2137_v40 = vld [vmem:[%s3000_s3 + $0x1e0] ss:$8 sps:$4 sm:$0xff]   ;;  %v2151_v57 = vld [vmem:[%s3000_s3 + $0x1a4] ss:$8 sps:$4 sm:$0xff]  }
 0x563   :  { %v2065_v42 = vpop.f32.mrf.mxu0  ;;  %1603 = vmatpush1.bf16.msra.mxu1 %v2137_v40 }
 0x564   :  { %v858_v45 = vadd.f32 %v2065_v42, %v2477_v28  ;;  %v2600_v36 = vadd.f32 %v867_v50, %v837_v60  ;;  %v879_v0 = vmul.f32 %v2586_v59, %v2586_v59  ;;  %v2142_v42 = vld [vmem:[%s3000_s3 + $0x1d4] ss:$8 sps:$4 sm:$0xff]  }
 0x565   :  { %v849_v43 = vpop.f32.mrf.mxu0  ;;  %1604 = vmatprep.subr.bf16.mxu1 %v2142_v42  ;;  %v2159_v60 = vld [vmem:[%s3005_s4 + $0x38] sm:$0xff]  }
 0x566   :  { %v2566_v55 = vadd.f32 %v867_v50, %v858_v45  ;;  %v850_v56 = vadd.f32 %v849_v43, %v2473_v8  ;;  %v877_v3 = vmul.f32 %v2600_v36, %v2600_v36  ;;  %v2632_v8 = vpop.permute.xlu0 %1082  ;;  %v2140_v43 = vld [vmem:[%s3000_s3 + $0x1d0] ss:$8 sps:$4 sm:$0xff]  }
 0x567   :  { %v2066_v48 = vpop.f32.mrf.mxu0  ;;  %1605 = vmatpush1.bf16.msra.mxu1 %v2140_v43  ;;  %v2165_v43 = vld [vmem:[%s3005_s4 + $0x20] sm:$0xff]  }
 0x568   :  { %v861_v51 = vadd.f32 %v2066_v48, %v792_v46  ;;  %v2580_v44 = vadd.f32 %v867_v50, %v850_v56  ;;  %v882_v41 = vmul.f32 %v2566_v55, %v2566_v55  ;;  %v2145_v48 = vld [vmem:[%s3000_s3 + $0x1c4] ss:$8 sps:$4 sm:$0xff]  }
 0x569   :  { %v852_v52 = vpop.f32.mrf.mxu0  ;;  %1606 = vmatprep.subr.bf16.mxu1 %v2145_v48  ;;  %v2166_v48 = vld [vmem:[%s3005_s4 + $0x58] sm:$0xff]  }
 0x56a   :  { %v2569_v49 = vadd.f32 %v867_v50, %v861_v51  ;;  %v853_v47 = vadd.f32 %v852_v52, %v2475_v14  ;;  %v880_v39 = vmul.f32 %v2580_v44, %v2580_v44  ;;  %v2636_v14 = vpop.permute.xlu0 %1020  ;;  %v2148_v51 = vld [vmem:[%s3000_s3 + $0x1b4] ss:$8 sps:$4 sm:$0xff]   ;;  %v2146_v52 = vld [vmem:[%s3000_s3 + $0x1b0] ss:$8 sps:$4 sm:$0xff]  }
 0x56c   :  { %v2575_v58 = vadd.f32 %v867_v50, %v853_v47  ;;  %v883_v33 = vmul.f32 %v2569_v49, %v2569_v49  ;;  %v2143_v50 = vld [vmem:[%s3000_s3 + $0x1c0] ss:$8 sps:$4 sm:$0xff]  }
 0x56d   :  { %1607 = vmatpush1.bf16.msra.mxu1 %v2143_v50  ;;  %v2167_v50 = vld [vmem:[%s3005_s4 + $0x18] sm:$0xff]  }
 0x56e   :  { %900 = vmatprep.subr.mxu0 %v883_v33  ;;  %v881_v61 = vmul.f32 %v2575_v58, %v2575_v58  ;;  %v2640_v28 = vpop.permute.xlu0 %1117  ;;  %1608 = vmatprep.subr.bf16.mxu1 %v2148_v51  ;;  %v2149_v33 = vld [vmem:[%s3000_s3 + $0x1a0] ss:$8 sps:$4 sm:$0xff]  }
 0x56f   :  { %901 = vmatpush1.msra.mxu0 %v2569_v49 }
 0x570   :  { %902 = vmatprep.subr.mxu0 %v882_v41  ;;  %v2158_v41 = vld [vmem:[%s3005_s4 + $0x78] sm:$0xff]  }
 0x571   :  { %903 = vmatpush1.msra.mxu0 %v2566_v55  ;;  %1609 = vmatpush1.bf16.msra.mxu1 %v2146_v52 }
 0x572   :  { %904 = vmatprep.subr.mxu0 %v881_v61  ;;  %v2644_v16 = vpop.permute.xlu0 %1090  ;;  %1610 = vmatprep.subr.bf16.mxu1 %v2151_v57  ;;  %v2160_v61 = vld [vmem:[%s3005_s4 + $0x70] sm:$0xff]  }
 0x573   :  { %905 = vmatpush1.msra.mxu0 %v2575_v58  ;;  %v2168_v57 = vld [vmem:[%s3005_s4 + $0x50] sm:$0xff]  }
 0x574   :  { %906 = vmatprep.subr.mxu0 %v880_v39 }
 0x575   :  { %907 = vmatpush1.msra.mxu0 %v2580_v44  ;;  %1611 = vmatpush1.bf16.msra.mxu1 %v2149_v33  ;;  %v2169_v33 = vld [vmem:[%s3005_s4 + $0x10] sm:$0xff]  }
 0x576   :  { %908 = vmatprep.subr.mxu0 %v879_v0  ;;  %v2648_v18 = vpop.permute.xlu0 %1156  ;;  %1612 = vmatprep.subr.bf16.mxu1 %v2154_v54 }
 0x577   :  { %909 = vmatpush1.msra.mxu0 %v2586_v59 }
 0x578   :  { %910 = vmatprep.subr.mxu0 %v878_v2  ;;  %v2162_v2 = vld [vmem:[%s3005_s4 + $0x68] sm:$0xff]  }
 0x579   :  { %911 = vmatpush1.msra.mxu0 %v2593_v62 }
 0x57a   :  { %912 = vmatprep.subr.mxu0 %v877_v3  ;;  %v2652_v21 = vpop.permute.xlu0 %1059  ;;  %v2152_v3 = vld [vmem:[%s3000_s3 + $0x190] ss:$8 sps:$4 sm:$0xff]  }
 0x57b   :  { %913 = vmatpush1.msra.mxu0 %v2600_v36  ;;  %1613 = vmatpush1.bf16.msra.mxu1 %v2152_v3 }
 0x57c   :  { %914 = vmatprep.subr.mxu0 %v876_v4  ;;  %v2157_v4 = vld [vmem:[%s3000_s3 + $0x184] ss:$8 sps:$4 sm:$0xff]  }
 0x57d   :  { %915 = vmatpush1.msra.mxu0 %v2606_v1  ;;  %1614 = vmatprep.subr.bf16.mxu1 %v2157_v4 }
 0x57e   :  { %1911 = vmatmul.mubr.msk.f32.vlgmr.msra.gmra.mxu0 %vm398_vm0, %v2181_v53  ;;  %v2642_v53 = vpop.permute.xlu1 %1152  ;;  %v2656_v24 = vpop.permute.xlu0 %1187  ;;  %1989 = vmatprep.subr.bf16.mxu0 %v2158_v41 }
 0x57f   :  { %3014 = vst [vmem:[#allocation4_spill] sm:$0xff] %v2656_v24  ;;  %1990 = vmatpush3.bf16.msra.mxu0 %v2159_v60  ;;  %1615 = vmatpush1.bf16.msra.mxu1 %v2155_v38 }
 0x580   :  { %1991 = vmatprep.subr.bf16.mxu0 %v2160_v61 }
 0x582   :  { %v2646_v17 = vpop.permute.xlu1 %1024  ;;  %v2660_v10 = vpop.permute.xlu0 %1094 }
 0x583   :  { %1992 = vmatpush3.bf16.msra.mxu0 %v2161_v63 }
 0x584   :  { %1993 = vmatprep.subr.bf16.mxu0 %v2162_v2 }
 0x586   :  { %v2650_v20 = vpop.permute.xlu1 %1125  ;;  %v2664_v32 = vpop.permute.xlu0 %1222 }
 0x587   :  { %1994 = vmatpush3.bf16.msra.mxu0 %v2163_v26 }
 0x588   :  { %1995 = vmatprep.subr.bf16.mxu0 %v2164_v34 }
 0x58a   :  { %v2654_v22 = vpop.permute.xlu1 %1191  ;;  %v2668_v19 = vpop.permute.xlu0 %1028 }
 0x58b   :  { %3013 = vst [vmem:[#allocation3_spill] sm:$0xff] %v2654_v22  ;;  %1996 = vmatpush3.bf16.msra.mxu0 %v2165_v43 }
 0x58c   :  { %1997 = vmatprep.subr.bf16.mxu0 %v2166_v48 }
 0x58e   :  { %v2658_v25 = vpop.permute.xlu1 %1160  ;;  %v2678_v37 = vpop.permute.xlu0 %1129 }
 0x58f   :  { %1998 = vmatpush3.bf16.msra.mxu0 %v2167_v50 }
 0x590   :  { %1999 = vmatprep.subr.bf16.mxu0 %v2168_v57 }
 0x592   :  { %v2662_v11 = vpop.permute.xlu1 %1226  ;;  %v2694_v46 = vpop.permute.xlu0 %1257 }
 0x593   :  { %3017 = vst [vmem:[#allocation7_spill] sm:$0xff] %v2694_v46  ;;  %2000 = vmatpush3.bf16.msra.mxu0 %v2169_v33 }
 0x596   :  { %v2666_v12 = vpop.permute.xlu1 %1063  ;;  %v2710_v47 = vpop.permute.xlu0 %1098 }
 0x59a   :  { %v2676_v35 = vpop.permute.xlu1 %1195  ;;  %v2735_v0 = vpop.permute.xlu0 %1230 }
 0x59b   :  { %3015 = vst [vmem:[#allocation5_spill] sm:$0xff] %v2676_v35 }
 0x59e   :  { %v2692_v45 = vpop.permute.xlu1 %1261  ;;  %v2757_v42 = vpop.permute.xlu0 %1067 }
 0x59f   :  { %3016 = vst [vmem:[#allocation6_spill] sm:$0xff] %v2692_v45 }
 0x5a2   :  { %v2708_v56 = vpop.permute.xlu1 %1164  ;;  %v2770_v52 = vpop.permute.xlu0 %1199 }
 0x5a3   :  { %3019 = vst [vmem:[#allocation9_spill] sm:$0xff] %v2770_v52 }
 0x5a6   :  { %v2733_v39 = vpop.permute.xlu1 %1032  ;;  %v2780_v41 = vpop.permute.xlu0 %1102 }
 0x5aa   :  { %v2755_v40 = vpop.permute.xlu1 %1133  ;;  %v2784_v63 = vpop.permute.xlu0 %1234 }
 0x5ae   :  { %v2768_v51 = vpop.permute.xlu1 %1265  ;;  %v2788_v43 = vpop.permute.xlu0 %1071 }
 0x5af   :  { %3018 = vst [vmem:[#allocation8_spill] sm:$0xff] %v2768_v51  ;;  %3020 = vst [vmem:[#allocation10_spill] sm:$0xff] %v2788_v43 }
 0x5b2   :  { %v2778_v54 = vpop.permute.xlu1 %1168  ;;  %v2792_v33 = vpop.permute.xlu0 %1203 }
 0x5b3   :  { %3022 = vst [vmem:[#allocation12_spill] sm:$0xff] %v2792_v33  ;;  %v3025_v33 = vsub.s32 5, %v2302_v30 }
 0x5b6   :  { %v2782_v61 = vpop.permute.xlu1 %1036  ;;  %v1107_v13 = vpop.permute.xlu0 %1106 }
 0x5ba   :  { %v2786_v38 = vpop.permute.xlu1 %1137  ;;  %v2796_v35 = vpop.permute.xlu0 %1238 }
 0x5be   :  { %v2790_v57 = vpop.permute.xlu1 %1269 }
 0x5bf   :  { %3021 = vst [vmem:[#allocation11_spill] sm:$0xff] %v2790_v57 }
 0x5c2   :  { %v1173_v23 = vpop.permute.xlu1 %1172 }
 0x63e   :  { %v950_v60 = vpop.f32.mrf.mxu0 }
 0x63f   :  { %v955_v2 = vmul.f32 0.015625, %v950_v60  ;;  %v2794_v60 = vpop.permute.xlu1 %1040 }
 0x640   :  { %v952_v3 = vpop.f32.mrf.mxu0 }
 0x641   :  { %v957_v4 = vmul.f32 %v955_v2, %v955_v2  ;;  %v956_v26 = vmul.f32 0.015625, %v952_v3  ;;  %v2801_v3 = vld [vmem:[%s3002_s5] sm:$0xff] }
 0x642   :  { %3023 = vst [vmem:[#allocation13_spill] sm:$0xff] %v2801_v3 }
 0x643   :  { %v958_v34 = vsub.f32 %v956_v26, %v957_v4 }
 0x645   :  { %v959_v48 = vmax.f32 %v958_v34, 0.0 }
 0x647   :  { %v960_v50 = vadd.f32 1e-05, %v959_v48  ;;  %v2804_v48 = vpop.permute.xlu1 %1141 }
 0x649   :  { %2176 = vrsqrt.f32 %v960_v50  ;;  %v2806_v50 = vpop.permute.xlu0 %1075 }
 0x64a   :  { %3024 = vst [vmem:[#allocation14_spill] sm:$0xff] %v2806_v50 }
 0x64d   :  { %v2819_v50 = vpop.permute.xlu0 %1207 }
 0x64e   :  { %3028 = vst [vmem:[#allocation16_spill] sm:$0xff] %v2819_v50 }
 0x656   :  { %v2177_v29 = vpop.eup %2176 }
 0x657   :  { %v963_v52 = vrot.slane %v2177_v29, 3 }
 0x659   :  { %v965_v4 = vmul.f32 %v2801_v3, %v963_v52  ;;  %v3026_v52 = vsub.s32 6, %v2302_v30 }
 0x65b   :  { %v967_v26 = vrot.slane %v965_v4, 5  ;;  %v977_v29 = vrot.slane %v965_v4, %v3025_v33 }
 0x65d   :  { %v969_v34 = vmul.f32 %v967_v26, %v955_v2  ;;  %v978_v57 = vmul.f32 %v977_v29, %v2606_v1  ;;  %v979_v51 = vmul.f32 %v977_v29, %v2600_v36  ;;  %v980_v45 = vmul.f32 %v977_v29, %v2593_v62  ;;  %v2817_v26 = vpop.permute.xlu1 %1273 }
 0x65e   :  { %v981_v2 = vmul.f32 %v977_v29, %v2586_v59  ;;  %3027 = vst [vmem:[#allocation15_spill] sm:$0xff] %v2817_v26  ;;  %v982_v33 = vmul.f32 %v977_v29, %v2580_v44  ;;  %v983_v4 = vmul.f32 %v977_v29, %v2575_v58  ;;  %v985_v1 = vmul.f32 %v977_v29, %v2569_v49 }
 0x65f   :  { %v971_v22 = vrot.slane %v969_v34, 2 }
 0x661   :  { %v973_v24 = vsub.f32 %v2801_v3, %v971_v22  ;;  %v984_v22 = vmul.f32 %v977_v29, %v2566_v55  ;;  %v2849_v29 = vpop.permute.xlu1 %1176 }
 0x663   :  { %v989_v46 = vrot.slane %v973_v24, %v3026_v52 }
 0x665   :  { %v990_v36 = vadd.f32 %v989_v46, %v978_v57  ;;  %v991_v34 = vadd.f32 %v989_v46, %v979_v51  ;;  %v992_v62 = vadd.f32 %v989_v46, %v980_v45  ;;  %v993_v3 = vadd.f32 %v989_v46, %v981_v2  ;;  %v2851_v2 = vpop.permute.xlu0 %1110 }
 0x666   :  { %v994_v30 = vadd.f32 %v989_v46, %v982_v33  ;;  %v995_v24 = vadd.f32 %v989_v46, %v983_v4  ;;  %v996_v52 = vadd.f32 %v989_v46, %v984_v22  ;;  %v997_v59 = vadd.f32 %v989_v46, %v985_v1 }
 0x667   :  { %v2825_v43 = vmax.f32 %v990_v36, 0.0  ;;  %v2827_v26 = vmax.f32 %v991_v34, 0.0  ;;  %v2829_v50 = vmax.f32 %v992_v62, 0.0  ;;  %v2831_v44 = vmax.f32 %v993_v3, 0.0 }
 0x668   :  { %v2833_v58 = vmax.f32 %v994_v30, 0.0  ;;  %v2835_v55 = vmax.f32 %v995_v24, 0.0  ;;  %v2837_v49 = vmax.f32 %v996_v52, 0.0  ;;  %v2839_v45 = vmax.f32 %v997_v59, 0.0  ;;  %v2889_v24 = vpop.permute.xlu1 %1145 }
 0x669   :  { %v1319_v51 = vadd.f32 %v2642_v53, %v2825_v43  ;;  %v1320_v46 = vadd.f32 %v2648_v18, %v2827_v26  ;;  %v1321_v57 = vadd.f32 %v2658_v25, %v2829_v50  ;;  %v1322_v3 = vadd.f32 %v2708_v56, %v2831_v44 }
 0x66a   :  { %v1323_v33 = vadd.f32 %v2778_v54, %v2833_v58  ;;  %v2856_v4 = vadd.f32 %v1173_v23, %v2835_v55  ;;  %v1303_v53 = vadd.f32 %v2632_v8, %v2825_v43  ;;  %v1304_v18 = vadd.f32 %v2630_v7, %v2827_v26 }
 0x66b   :  { %v1403_v25 = vmax.f32 %v1319_v51, %v1320_v46  ;;  %v1305_v56 = vadd.f32 %v2644_v16, %v2829_v50  ;;  %v1306_v22 = vadd.f32 %v2660_v10, %v2831_v44  ;;  %v1307_v1 = vadd.f32 %v2710_v47, %v2833_v58 }
 0x66c   :  { %v1308_v23 = vadd.f32 %v2780_v41, %v2835_v55  ;;  %v1309_v54 = vadd.f32 %v1107_v13, %v2837_v49  ;;  %v1377_v36 = vmax.f32 %v1303_v53, %v1304_v18  ;;  %v1287_v8 = vadd.f32 %v2624_v31, %v2825_v43 }
 0x66d   :  { %v1404_v7 = vmax.f32 %v1403_v25, %v1321_v57  ;;  %v1288_v34 = vadd.f32 %v2628_v6, %v2827_v26  ;;  %v1289_v16 = vadd.f32 %v2636_v14, %v2829_v50  ;;  %v1290_v10 = vadd.f32 %v2646_v17, %v2831_v44  ;;  %v2891_v17 = vpop.permute.xlu0 %1242 }
 0x66e   :  { %v1378_v47 = vmax.f32 %v1377_v36, %v1305_v56  ;;  %v1291_v41 = vadd.f32 %v2668_v19, %v2833_v58  ;;  %v1292_v13 = vadd.f32 %v2733_v39, %v2835_v55  ;;  %v1293_v31 = vadd.f32 %v2782_v61, %v2837_v49 }
 0x66f   :  { %v1405_v62 = vmax.f32 %v1404_v7, %v1322_v3  ;;  %v1294_v6 = vadd.f32 %v2794_v60, %v2839_v45  ;;  %v1351_v30 = vmax.f32 %v1287_v8, %v1288_v34  ;;  %v1335_v14 = vadd.f32 %v2664_v32, %v2825_v43  ;;  %v3030_v34 = vld [vmem:[#allocation14_spill] sm:$0xff] }
 0x670   :  { %v1379_v52 = vmax.f32 %v1378_v47, %v1306_v22  ;;  %v1336_v19 = vadd.f32 %v2662_v11, %v2827_v26  ;;  %v1337_v39 = vadd.f32 %v2735_v0, %v2829_v50  ;;  %v1338_v61 = vadd.f32 %v2784_v63, %v2831_v44 }
 0x671   :  { %v2899_v59 = vmax.f32 %v1405_v62, %v1323_v33  ;;  %v1352_v60 = vmax.f32 %v1351_v30, %v1289_v16  ;;  %v1339_v32 = vadd.f32 %v2796_v35, %v2833_v58  ;;  %v1311_v51 = vadd.f32 %v2640_v28, %v2825_v43  ;;  %v1212_v22 = vpop.permute.xlu0 %1211 }
 0x672   :  { %v1380_v46 = vmax.f32 %v1379_v52, %v1307_v1  ;;  %v1429_v57 = vmax.f32 %v1335_v14, %v1336_v19  ;;  %v1312_v11 = vadd.f32 %v2638_v15, %v2827_v26  ;;  %v1313_v0 = vadd.f32 %v2650_v20, %v2829_v50  ;;  %v3034_v14 = vld [vmem:[#allocation11_spill] sm:$0xff] }
 0x673   :  { %v1407_v63 = vmax.f32 %v2899_v59, %v2856_v4  ;;  %v1353_v3 = vmax.f32 %v1352_v60, %v1290_v10  ;;  %v1314_v33 = vadd.f32 %v2678_v37, %v2831_v44  ;;  %v1315_v35 = vadd.f32 %v2755_v40, %v2833_v58  ;;  %v1278_v37 = vpop.permute.xlu1 %1277  ;;  %v3035_v19 = vld [vmem:[#allocation15_spill] sm:$0xff]  ;;  %v3036_v60 = vld [vmem:[#allocation4_spill] sm:$0xff] }
 0x674   :  { %v1381_v53 = vmax.f32 %v1380_v46, %v1308_v23  ;;  %v1430_v28 = vmax.f32 %v1429_v57, %v1337_v39  ;;  %v1316_v18 = vadd.f32 %v2786_v38, %v2835_v55  ;;  %v1317_v15 = vadd.f32 %v2804_v48, %v2837_v49 }
 0x675   :  { %v1354_v25 = vmax.f32 %v1353_v3, %v1291_v41  ;;  %v1390_v20 = vmax.f32 %v1311_v51, %v1312_v11  ;;  %v1295_v4 = vadd.f32 %v2622_v27, %v2825_v43  ;;  %v1296_v56 = vadd.f32 %v2626_v5, %v2827_v26  ;;  %v3029_v5 = vld [vmem:[#allocation10_spill] sm:$0xff]  ;;  %v1181_v46 = vpop.permute.xlu0 %1180  ;;  %v3037_v11 = vld [vmem:[#allocation3_spill] sm:$0xff]  ;;  %v3038_v3 = vld [vmem:[#allocation5_spill] sm:$0xff] }
 0x676   :  { %v1382_v1 = vmax.f32 %v1381_v53, %v1309_v54  ;;  %v1431_v40 = vmax.f32 %v1430_v28, %v1338_v61  ;;  %v1297_v23 = vadd.f32 %v2634_v9, %v2829_v50  ;;  %v1298_v38 = vadd.f32 %v2652_v21, %v2831_v44  ;;  %v3031_v21 = vld [vmem:[#allocation7_spill] sm:$0xff]  ;;  %v3039_v53 = vld [vmem:[#allocation9_spill] sm:$0xff] }
 0x677   :  { %v1355_v36 = vmax.f32 %v1354_v25, %v1292_v13  ;;  %v1391_v48 = vmax.f32 %v1390_v20, %v1313_v0  ;;  %v1299_v8 = vadd.f32 %v2666_v12, %v2833_v58  ;;  %v1300_v27 = vadd.f32 %v2757_v42, %v2835_v55  ;;  %v3032_v13 = vld [vmem:[#allocation6_spill] sm:$0xff]  ;;  %v3033_v42 = vld [vmem:[#allocation8_spill] sm:$0xff]  ;;  %v1247_v51 = vpop.permute.xlu1 %1246 }
 0x678   :  { %v2931_v7 = vmax.f32 %v1431_v40, %v1339_v32  ;;  %v1301_v54 = vadd.f32 %v3029_v5, %v2837_v49  ;;  %v1302_v16 = vadd.f32 %v3030_v34, %v2839_v45  ;;  %v1364_v9 = vmax.f32 %v1295_v4, %v1296_v56 }
 0x679   :  { %v1356_v10 = vmax.f32 %v1355_v36, %v1293_v31  ;;  %v1392_v47 = vmax.f32 %v1391_v48, %v1314_v33  ;;  %v1343_v41 = vadd.f32 %v3031_v21, %v2825_v43  ;;  %v1344_v12 = vadd.f32 %v3032_v13, %v2827_v26 }
 0x67a   :  { %v1365_v62 = vmax.f32 %v1364_v9, %v1297_v23  ;;  %v1345_v30 = vadd.f32 %v3033_v42, %v2829_v50  ;;  %v1346_v52 = vadd.f32 %v3034_v14, %v2831_v44  ;;  %v1347_v39 = vadd.f32 %v3035_v19, %v2833_v58 }
 0x67b   :  { %v1357_v61 = vmax.f32 %v1356_v10, %v1294_v6  ;;  %v1393_v59 = vmax.f32 %v1392_v47, %v1315_v35  ;;  %v1442_v31 = vmax.f32 %v1343_v41, %v1344_v12  ;;  %v1327_v32 = vadd.f32 %v3036_v60, %v2825_v43  ;;  %v3040_v35 = vld [vmem:[#allocation12_spill] sm:$0xff]  ;;  %v1282_v47 = vpop.permute.xlu1 %1281 }
 0x67c   :  { %v1366_v57 = vmax.f32 %v1365_v62, %v1298_v38  ;;  %v1328_v0 = vadd.f32 %v3037_v11, %v2827_v26  ;;  %v1329_v33 = vadd.f32 %v3038_v3, %v2829_v50  ;;  %v1330_v28 = vadd.f32 %v3039_v53, %v2831_v44  ;;  %v3041_v43 = vld [vmem:[#allocation16_spill] sm:$0xff] }
 0x67d   :  { %v1358_v25 = vrot.slane %v1357_v61, 4  ;;  %v1394_v20 = vmax.f32 %v1393_v59, %v1316_v18  ;;  %v1443_v6 = vmax.f32 %v1442_v31, %v1345_v30  ;;  %v1331_v4 = vadd.f32 %v3040_v35, %v2833_v58 }
 0x67e   :  { %v1367_v56 = vmax.f32 %v1366_v57, %v1299_v8  ;;  %v1332_v40 = vadd.f32 %v3041_v43, %v2835_v55  ;;  %v1416_v23 = vmax.f32 %v1327_v32, %v1328_v0  ;;  %v1325_v26 = vadd.f32 %v2849_v29, %v2837_v49  ;;  %v1216_v29 = vpop.permute.xlu0 %1215 }
 0x67f   :  { %v1359_v38 = vmax.f32 %v1357_v61, %v1358_v25  ;;  %v1395_v36 = vmax.f32 %v1394_v20, %v1317_v15  ;;  %v1444_v50 = vmax.f32 %v1443_v6, %v1346_v52  ;;  %v1310_v44 = vadd.f32 %v2851_v2, %v2839_v45  ;;  %v1286_v59 = vpop.permute.xlu1 %1285 }
 0x680   :  { %v1368_v48 = vmax.f32 %v1367_v56, %v1300_v27  ;;  %v1417_v18 = vmax.f32 %v1416_v23, %v1329_v33  ;;  %v1408_v5 = vmax.f32 %v1407_v63, %v1325_v26  ;;  %v1318_v58 = vadd.f32 %v2889_v24, %v2839_v45 }
 0x681   :  { %v1360_v8 = vrot.slane %v1359_v38, 2  ;;  %v1445_v34 = vmax.f32 %v1444_v50, %v1347_v39  ;;  %v1383_v9 = vmax.f32 %v1382_v1, %v1310_v44  ;;  %v1340_v10 = vadd.f32 %v2891_v17, %v2835_v55 }
 0x682   :  { %v1369_v21 = vmax.f32 %v1368_v48, %v1301_v54  ;;  %v1418_v15 = vmax.f32 %v1417_v18, %v1330_v28  ;;  %v1396_v41 = vmax.f32 %v1395_v36, %v1318_v58  ;;  %v1348_v13 = vadd.f32 %v1278_v37, %v2835_v55 }
 0x683   :  { %v1361_v2 = vmax.f32 %v1359_v38, %v1360_v8  ;;  %v1384_v27 = vrot.slane %v1383_v9, 4  ;;  %v1433_v63 = vmax.f32 %v2931_v7, %v1340_v10  ;;  %v1333_v12 = vadd.f32 %v1212_v22, %v2837_v49  ;;  %v1251_v22 = vpop.permute.xlu0 %1250 }
 0x684   :  { %v1370_v24 = vmax.f32 %v1369_v21, %v1302_v16  ;;  %v1419_v62 = vmax.f32 %v1418_v15, %v1331_v4  ;;  %v1397_v42 = vrot.slane %v1396_v41, 4  ;;  %v1446_v1 = vmax.f32 %v1445_v34, %v1348_v13 }
 0x685   :  { %v1362_v30 = vrot.slane %v1361_v2, 1  ;;  %v1385_v14 = vmax.f32 %v1383_v9, %v1384_v27  ;;  %v1341_v17 = vadd.f32 %v1247_v51, %v2837_v49  ;;  %v1326_v54 = vadd.f32 %v1181_v46, %v2839_v45 }
 0x686   :  { %v1371_v52 = vrot.slane %v1370_v24, 4  ;;  %v1420_v19 = vmax.f32 %v1419_v62, %v1332_v40  ;;  %v1398_v39 = vmax.f32 %v1396_v41, %v1397_v42  ;;  %v1349_v55 = vadd.f32 %v1282_v47, %v2837_v49 }
 0x687   :  { %v1386_v37 = vrot.slane %v1385_v14, 2  ;;  %v1434_v61 = vmax.f32 %v1433_v63, %v1341_v17  ;;  %v1409_v7 = vmax.f32 %v1408_v5, %v1326_v54  ;;  %v1363_v57 = vmax.f32 %v1361_v2, %v1362_v30 }
 0x688   :  { %v1372_v16 = vmax.f32 %v1370_v24, %v1371_v52  ;;  %v1399_v31 = vrot.slane %v1398_v39, 2  ;;  %v1421_v60 = vmax.f32 %v1420_v19, %v1333_v12  ;;  %v1447_v32 = vmax.f32 %v1446_v1, %v1349_v55 }
 0x689   :  { %v1387_v11 = vmax.f32 %v1385_v14, %v1386_v37  ;;  %v1410_v0 = vrot.slane %v1409_v7, 4  ;;  %v1334_v51 = vadd.f32 %v1216_v29, %v2839_v45  ;;  %v1350_v33 = vadd.f32 %v1286_v59, %v2839_v45 }
 0x68a   :  { %v1373_v46 = vrot.slane %v1372_v16, 2  ;;  %v1400_v3 = vmax.f32 %v1398_v39, %v1399_v31  ;;  %v1342_v49 = vadd.f32 %v1251_v22, %v2839_v45  ;;  %v1455_v56 = vpack.c.bf16 %v1363_v57, %v1363_v57 }
 0x68b   :  { %v1388_v53 = vrot.slane %v1387_v11, 1  ;;  %v1411_v28 = vmax.f32 %v1409_v7, %v1410_v0  ;;  %v1422_v25 = vmax.f32 %v1421_v60, %v1334_v51  ;;  %v1448_v35 = vmax.f32 %v1447_v32, %v1350_v33  ;;  %v2171_v0 = vld [vmem:[%s3005_s4 + $0x8] sm:$0xff]   ;;  %v2172_v51 = vld [vmem:[%s3005_s4 + $0x40] sm:$0xff]  }
 0x68c   :  { %v1374_v20 = vmax.f32 %v1372_v16, %v1373_v46  ;;  %v1401_v6 = vrot.slane %v1400_v3, 1  ;;  %v1435_v4 = vmax.f32 %v1434_v61, %v1342_v49  ;;  %v1496_v8 = vunpack.c.l.b16 %v1455_v56  ;;  %v2173_v46 = vld [vmem:[%s3005_s4] sm:$0xff]   ;;  %v3043_v49 = vld [vmem:[#allocation13_spill] sm:$0xff] }
 0x68d   :  { %v1389_v43 = vmax.f32 %v1387_v11, %v1388_v53  ;;  %v1412_v40 = vrot.slane %v1411_v28, 2  ;;  %v1423_v23 = vrot.slane %v1422_v25, 4  ;;  %v1449_v36 = vrot.slane %v1448_v35, 4  ;;  %v2170_v11 = vld [vmem:[%s3005_s4 + $0x48] sm:$0xff]   ;;  %v3042_v33 = vld [vmem:[#allocation2_spill] sm:$0xff] }
 0x68e   :  { %v1375_v26 = vrot.slane %v1374_v20, 1  ;;  %v1402_v38 = vmax.f32 %v1400_v3, %v1401_v6  ;;  %v1436_v50 = vrot.slane %v1435_v4, 4  ;;  %2001 = vmatprep.subr.bf16.mxu0 %v2170_v11  ;;  %v25_v3 = vld [vmem:[%s3002_s5 + $0x8] sm:$0xff]  ;;  %v1483_v53 = vrot.slane %v3043_v49, %v3042_v33 }
 0x68f   :  { %v1457_v44 = vpack.c.bf16 %v1389_v43, %v1389_v43  ;;  %v1413_v48 = vmax.f32 %v1411_v28, %v1412_v40  ;;  %v1424_v18 = vmax.f32 %v1422_v25, %v1423_v23  ;;  %v1450_v45 = vmax.f32 %v1448_v35, %v1449_v36  ;;  %2002 = vmatpush3.bf16.msra.mxu0 %v2171_v0  ;;  %v1944_v36 = vld [vmem:[%s3002_s5 + $0x10] ss:$0 sm:$0xff] }
 0x690   :  { %v1376_v5 = vmax.f32 %v1374_v20, %v1375_v26  ;;  %v1437_v58 = vmax.f32 %v1435_v4, %v1436_v50  ;;  %v1458_v47 = vpack.c.bf16 %v1402_v38, %v1402_v38  ;;  %2003 = vmatprep.subr.bf16.mxu0 %v2172_v51  ;;  %v1487_v28 = vrot.slane %v25_v3, %v3042_v33 }
 0x691   :  { %v1414_v34 = vrot.slane %v1413_v48, 1  ;;  %v1425_v9 = vrot.slane %v1424_v18, 2  ;;  %v1451_v29 = vrot.slane %v1450_v45, 2  ;;  %v1498_v15 = vunpack.c.l.b16 %v1457_v44 }
 0x692   :  { %v1456_v10 = vpack.c.bf16 %v1376_v5, %v1376_v5  ;;  %v1438_v21 = vrot.slane %v1437_v58, 2  ;;  %v1499_v42 = vunpack.c.l.b16 %v1458_v47 }
 0x693   :  { %v1415_v41 = vmax.f32 %v1413_v48, %v1414_v34  ;;  %v1426_v13 = vmax.f32 %v1424_v18, %v1425_v9  ;;  %v1452_v27 = vmax.f32 %v1450_v45, %v1451_v29  ;;  %2004 = vmatpush3.bf16.msra.mxu0 %v2173_v46 }
 0x694   :  { %v1497_v2 = vunpack.c.l.b16 %v1456_v10  ;;  %v1439_v63 = vmax.f32 %v1437_v58, %v1438_v21 }
 0x695   :  { %v1459_v12 = vpack.c.bf16 %v1415_v41, %v1415_v41  ;;  %v1427_v24 = vrot.slane %v1426_v13, 1  ;;  %v1453_v1 = vrot.slane %v1452_v27, 1 }
 0x696   :  { %v1505_v62 = vsel %vm1504_vm1, %v1497_v2, %v1496_v8  ;;  %v1440_v30 = vrot.slane %v1439_v63, 1 }
 0x697   :  { %v1507_v14 = vsel %vm1506_vm2, %v1498_v15, %v1505_v62  ;;  %v1428_v17 = vmax.f32 %v1426_v13, %v1427_v24  ;;  %v1500_v52 = vunpack.c.l.b16 %v1459_v12  ;;  %v1454_v19 = vmax.f32 %v1452_v27, %v1453_v1 }
 0x698   :  { %v1509_v54 = vsel %vm1508_vm3, %v1499_v42, %v1507_v14  ;;  %v1441_v39 = vmax.f32 %v1439_v63, %v1440_v30 }
 0x699   :  { %v1460_v55 = vpack.c.bf16 %v1428_v17, %v1428_v17  ;;  %v1511_v37 = vsel %vm1510_vm4, %v1500_v52, %v1509_v54  ;;  %v1462_v61 = vpack.c.bf16 %v1454_v19, %v1454_v19 }
 0x69a   :  { %v1461_v7 = vpack.c.bf16 %v1441_v39, %v1441_v39 }
 0x69b   :  { %v1501_v59 = vunpack.c.l.b16 %v1460_v55  ;;  %v1503_v31 = vunpack.c.l.b16 %v1462_v61 }
 0x69c   :  { %v1502_v22 = vunpack.c.l.b16 %v1461_v7 }
 0x69d   :  { %v1513_v16 = vsel %vm1512_vm5, %v1501_v59, %v1511_v37 }
 0x69e   :  { %v1515_v60 = vsel %vm1514_vm6, %v1502_v22, %v1513_v16 }
 0x69f   :  { %v1517_v32 = vsel %vm1516_vm7, %v1503_v31, %v1515_v60 }
 0x6a0   :  { %v1518_v57 = vpack.c.b16 %v1517_v32, %v1517_v32 }
 0x6a2   :  { %1633 = vmatmul.mubr.bf16.vlgmr.msra.gmra.mxu1 %v1518_v57 }
 0x762   :  { %v1634_v25 = vpop.f32.mrf.mxu1 }
 0x763   :  { %v1635_v20 = vadd.f32 %v1634_v25, %v1483_v53 }
 0x764   :  { %v1636_v6 = vpop.f32.mrf.mxu1 }
 0x765   :  { %v1637_v35 = vadd.f32 %v1636_v6, %v1487_v28  ;;  %v1641_v4 = vmax.f32 %v1635_v20, 0.0 }
 0x766   :  { %v1638_v56 = vpop.f32.mrf.mxu1 }
 0x767   :  { %v1642_v43 = vmax.f32 %v1637_v35, 0.0  ;;  %v1643_v26 = vpack.c.bf16 %v1641_v4, %v1641_v4 }
 0x768   :  { %v1639_v40 = vpop.f32.mrf.mxu1 }
 0x769   :  { %v1644_v23 = vpack.c.bf16 %v1642_v43, %v1642_v43 }
 0x76b   :  { %1809 = vmatprep.mubr.bf16.mxu0 %v1644_v23 }
 0x76c   :  { %1810 = vmatmul.mubr.bf16.vlgmr.msra.gmra.mxu0 %v1643_v26 }
 0x82c   :  { %v2005_v38 = vpop.f32.mrf.mxu0 }
 0x82e   :  { %v2006_v50 = vpop.f32.mrf.mxu0 }
 0x82f   :  { %v2007_v44 = vadd.f32 %v2006_v50, %v2005_v38 }
 0x830   :  { %v2008_v48 = vpop.f32.mrf.mxu0 }
 0x831   :  { %v1812_v18 = vadd.f32 %v2007_v44, %v1944_v36 }
 0x832   :  { %v2009_v5 = vpop.f32.mrf.mxu0 }
 0x833   :  { %1817 = vst [vmem:[%s3006_s6] sm:$0xff] %v1812_v18 }

</bundles_post_ra>
